<compile_context>
chip_gen: v6e
topology: v6e:2x2x1
jax: 0.10.0
libtpu: 0.0.40
codegen_flags: <defaults>
</compile_context>

<pallas_src>
import functools

import jax
import jax.numpy as jnp
from jax.experimental import pallas as pl
from jax.experimental.pallas import tpu as pltpu

COMPUTE_DTYPE = jnp.bfloat16          # activation / MXU-operand dtype


# ------------------------- generation-dependent config -----------------------

def _tpu_vmem_capacity_bytes():
    try:
        info = pltpu.get_tpu_info()
        cap = getattr(info, "vmem_capacity_bytes", None)
        if cap:
            return int(cap)
    except Exception:
        pass
    return 64 * 1024 * 1024            # conservative fallback (v7x per-TC)


_VMEM_CAP = _tpu_vmem_capacity_bytes()
_VMEM_LIMIT = min((_VMEM_CAP * 3) // 4, 100 * 1024 * 1024)

if _VMEM_CAP >= 96 * 1024 * 1024:      # v5e / v6e: 128 MiB VMEM
    _LANE_TILE_CANDIDATES = (1024, 768, 512, 384, 256, 128)
    _ROW_TILE_MAX = 512
else:                                  # v7x: 64 MiB per TensorCore
    _LANE_TILE_CANDIDATES = (512, 384, 256, 128)
    _ROW_TILE_MAX = 256


def _round_up(x, m):
    return ((x + m - 1) // m) * m


def _pick_tile(dim, candidates=_LANE_TILE_CANDIDATES):
    """Largest 128-multiple tile that divides dim exactly, else the full dim."""
    for c in candidates:
        if dim % c == 0:
            return c
    return dim


def _pick_row_tile(m, max_tile=_ROW_TILE_MAX):
    """Row tile: whole M if small; else the largest 8-multiple divisor of M (no padding);
    else max_tile (padding)."""
    if m <= max_tile:
        return _round_up(m, 8)
    start = (min(max_tile, m) // 8) * 8
    for t in range(start, 7, -8):
        if m % t == 0:
            return t
    return max_tile


# ----------------------- fused linear (matmul) kernel ------------------------

def _linear_kernel(*refs, n_k, activation, fuse_ln, has_residual, use_acc):
    idx = 0
    x_ref = refs[idx]; idx += 1
    w_ref = refs[idx]; idx += 1
    b_ref = refs[idx]; idx += 1
    if fuse_ln:
        g_ref = refs[idx]; idx += 1
        beta_ref = refs[idx]; idx += 1
    if has_residual:
        res_ref = refs[idx]; idx += 1
    o_ref = refs[idx]; idx += 1
    if fuse_ln:
        xn_ref = refs[idx]; idx += 1
    if use_acc:
        acc_ref = refs[idx]; idx += 1

    def _epilogue(y):                      # y: f32 (tm, tn)
        if activation == "gelu":
            y = jax.nn.gelu(y, approximate=True)
        if has_residual:
            y = y + res_ref[...].astype(jnp.float32)
        o_ref[...] = y.astype(o_ref.dtype)

    if fuse_ln:
        # LayerNorm computed once per row tile (j == 0), cached in bf16 scratch.
        @pl.when(pl.program_id(1) == 0)
        def _():
            xf = x_ref[...].astype(jnp.float32)
            mu = jnp.mean(xf, axis=-1, keepdims=True)
            var = jnp.mean(jnp.square(xf - mu), axis=-1, keepdims=True)
            xf = (xf - mu) * jax.lax.rsqrt(var + 1e-5)
            xf = xf * g_ref[...].astype(jnp.float32) + beta_ref[...].astype(jnp.float32)
            xn_ref[...] = xf.astype(xn_ref.dtype)
        x = xn_ref[...]
    else:
        x = x_ref[...]

    part = jnp.dot(x, w_ref[...], preferred_element_type=jnp.float32)

    if not use_acc:
        # Single-K path: no accumulator scratch, store directly.
        _epilogue(part + b_ref[...].astype(jnp.float32))
    else:
        k = pl.program_id(2)

        @pl.when(k == 0)
        def _():
            acc_ref[...] = jnp.zeros_like(acc_ref)

        acc_ref[...] += part

        @pl.when(k == n_k - 1)
        def _():
            _epilogue(acc_ref[...] + b_ref[...].astype(jnp.float32))


def fused_linear(x, w, b, *, activation=None, ln=None, residual=None, out_dtype=None):
    """y = act( LN?(x) @ w + b ) [+ residual].  x: [..., K], w: [K, N], b: [N]."""
    out_dtype = out_dtype or x.dtype
    orig_shape = x.shape
    K = orig_shape[-1]
    N = w.shape[1]
    x2 = x.reshape(-1, K)
    M = x2.shape[0]

    tm = _pick_row_tile(M)
    Mp = _round_up(M, tm)
    pad = Mp - M
    if pad:
        x2 = jnp.pad(x2, ((0, pad), (0, 0)))

    tn = _pick_tile(N)
    tk = K if ln is not None else _pick_tile(K)   # LN fusion needs the whole feature row
    grid = (Mp // tm, N // tn, K // tk)
    n_k = grid[2]
    fuse_ln = ln is not None
    has_residual = residual is not None
    use_acc = n_k > 1

    kernel = functools.partial(_linear_kernel, n_k=n_k, activation=activation,
                               fuse_ln=fuse_ln, has_residual=has_residual,
                               use_acc=use_acc)

    in_specs = [
        pl.BlockSpec((tm, tk), lambda i, j, k: (i, k)),
        pl.BlockSpec((tk, tn), lambda i, j, k: (k, j)),
        pl.BlockSpec((1, tn), lambda i, j, k: (0, j)),
    ]
    inputs = [x2, w, b.reshape(1, N)]
    if fuse_ln:
        g, beta = ln
        in_specs += [
            pl.BlockSpec((1, K), lambda i, j, k: (0, 0)),
            pl.BlockSpec((1, K), lambda i, j, k: (0, 0)),
        ]
        inputs += [g.reshape(1, K), beta.reshape(1, K)]
    if has_residual:
        r2 = residual.reshape(-1, N)
        if pad:
            r2 = jnp.pad(r2, ((0, pad), (0, 0)))
        in_specs.append(pl.BlockSpec((tm, tn), lambda i, j, k: (i, j)))
        inputs.append(r2)

    scratch_shapes = []
    if fuse_ln:
        scratch_shapes.append(pltpu.VMEM((tm, K), COMPUTE_DTYPE))
    if use_acc:
        scratch_shapes.append(pltpu.VMEM((tm, tn), jnp.float32))

    # j must be "arbitrary" when the LN scratch is reused across N tiles.
    j_sem = "arbitrary" if fuse_ln else "parallel"

    out = pl.pallas_call(
        kernel,
        out_shape=jax.ShapeDtypeStruct((Mp, N), out_dtype),
        grid=grid,
        in_specs=in_specs,
        out_specs=pl.BlockSpec((tm, tn), lambda i, j, k: (i, j)),
        scratch_shapes=scratch_shapes,
        compiler_params=pltpu.CompilerParams(
            dimension_semantics=("parallel", j_sem, "arbitrary"),
            vmem_limit_bytes=_VMEM_LIMIT),
    )(*inputs)
    if pad:
        out = out[:M]
    return out.reshape(orig_shape[:-1] + (N,))


# --------------------------- layernorm (row-tiled) ---------------------------

def _layernorm_kernel(x_ref, g_ref, b_ref, o_ref):
    x = x_ref[...].astype(jnp.float32)
    mu = jnp.mean(x, axis=-1, keepdims=True)
    var = jnp.mean(jnp.square(x - mu), axis=-1, keepdims=True)
    y = (x - mu) * jax.lax.rsqrt(var + 1e-5)
    o_ref[...] = (y * g_ref[...].astype(jnp.float32)
                  + b_ref[...].astype(jnp.float32)).astype(o_ref.dtype)


def layernorm(x, g, b, *, out_dtype=None):
    out_dtype = out_dtype or x.dtype
    orig = x.shape
    D = orig[-1]
    x2 = x.reshape(-1, D)
    M = x2.shape[0]
    tm = _pick_row_tile(M)
    Mp = _round_up(M, tm)
    if Mp != M:
        x2 = jnp.pad(x2, ((0, Mp - M), (0, 0)))
    out = pl.pallas_call(
        _layernorm_kernel,
        out_shape=jax.ShapeDtypeStruct((Mp, D), out_dtype),
        grid=(Mp // tm,),
        in_specs=[
            pl.BlockSpec((tm, D), lambda i: (i, 0)),
            pl.BlockSpec((1, D), lambda i: (0, 0)),
            pl.BlockSpec((1, D), lambda i: (0, 0)),
        ],
        out_specs=pl.BlockSpec((tm, D), lambda i: (i, 0)),
        compiler_params=pltpu.CompilerParams(
            dimension_semantics=("parallel",),
            vmem_limit_bytes=_VMEM_LIMIT),
    )(x2, g.reshape(1, D), b.reshape(1, D))
    if Mp != M:
        out = out[:M]
    return out.reshape(orig)


# -------- attention (head split + softmax + out_proj + residual fused) -------

def _attention_kernel(qkv_ref, wo_ref, bo_ref, res_ref, o_ref, ctx_ref,
                      *, n_heads, scale, causal):
    S, D3 = qkv_ref.shape
    D = D3 // 3
    Dh = D // n_heads

    if causal:
        row = jax.lax.broadcasted_iota(jnp.int32, (S, S), 0)
        col = jax.lax.broadcasted_iota(jnp.int32, (S, S), 1)
        mask = col > row                                  # built once, before head loop

    for h in range(n_heads):
        # bf16 slices straight off the ref (static views, no full-tile upcast)
        qh = qkv_ref[:, h * Dh:(h + 1) * Dh]
        kh = qkv_ref[:, D + h * Dh: D + (h + 1) * Dh]
        vh = qkv_ref[:, 2 * D + h * Dh: 2 * D + (h + 1) * Dh]

        s = jax.lax.dot_general(qh, kh, (((1,), (1,)), ((), ())),
                                preferred_element_type=jnp.float32) * scale   # [S, S] f32
        if causal:
            s = jnp.where(mask, -1e9, s)
        s = s - jnp.max(s, axis=-1, keepdims=True)
        p = jnp.exp(s)
        p = p * pl.reciprocal(jnp.sum(p, axis=-1, keepdims=True), approx=True)

        oh = jnp.dot(p.astype(vh.dtype), vh, preferred_element_type=jnp.float32)  # [S, Dh]
        # park the head output in its column slice of the [S, D] context scratch;
        # per-iteration values die at this store (bounded live ranges).
        ctx_ref[:, h * Dh:(h + 1) * Dh] = oh.astype(ctx_ref.dtype)

    # single full-K out-projection (K = D), bias + residual fused into the epilogue
    acc = jnp.dot(ctx_ref[...], wo_ref[...], preferred_element_type=jnp.float32)
    o_ref[...] = (acc + bo_ref[...].astype(jnp.float32)
                  + res_ref[...].astype(jnp.float32)).astype(o_ref.dtype)


def attention_block(qkv, wo, bo, residual, *, n_heads, causal, out_dtype):
    """qkv: [B, S, 3D] (output of ln_1+in_proj); returns residual + attn_out @ Wo + bo."""
    B, S, D3 = qkv.shape
    D = D3 // 3
    scale = 1.0 / float((D // n_heads) ** 0.5)
    kernel = functools.partial(_attention_kernel, n_heads=n_heads, scale=scale,
                               causal=causal)
    return pl.pallas_call(
        kernel,
        out_shape=jax.ShapeDtypeStruct((B, S, D), out_dtype),
        grid=(B,),
        in_specs=[
            pl.BlockSpec((None, S, D3), lambda b: (b, 0, 0)),
            pl.BlockSpec((D, D), lambda b: (0, 0)),
            pl.BlockSpec((1, D), lambda b: (0, 0)),
            pl.BlockSpec((None, S, D), lambda b: (b, 0, 0)),
        ],
        out_specs=pl.BlockSpec((None, S, D), lambda b: (b, 0, 0)),
        scratch_shapes=[pltpu.VMEM((S, D), COMPUTE_DTYPE)],
        compiler_params=pltpu.CompilerParams(
            dimension_semantics=("parallel",),
            vmem_limit_bytes=_VMEM_LIMIT),
    )(qkv, wo, bo.reshape(1, D), residual)


# ------------------------- Transformer building block -----------------------

def resblock(x, p, n_heads, causal):
    """Pre-LN CLIP residual attention block.  x: [B, S, D] (bf16 residual stream)."""
    # attention branch: ln_1 fused into the qkv projection; out_proj + residual fused
    qkv = fused_linear(x, p['in_proj_w'], p['in_proj_b'], ln=(p['ln1_g'], p['ln1_b']))
    x = attention_block(qkv, p['out_proj_w'], p['out_proj_b'], x,
                        n_heads=n_heads, causal=causal, out_dtype=x.dtype)

    # MLP branch: ln_2 + fc + GELU fused; projection back to D with residual fused
    h = fused_linear(x, p['fc_w'], p['fc_b'], ln=(p['ln2_g'], p['ln2_b']),
                     activation='gelu')
    x = fused_linear(h, p['proj_w'], p['proj_b'], residual=x)
    return x


# ------------------------------- CLIP forward --------------------------------

def encode_image(img, vp, cfg, feats):
    """img: [B, C, H, W] (NCHW).  Returns projected image embedding [B, embed_dim]."""
    B, C, H, W = img.shape
    P = cfg['patch']
    D = cfg['vis_width']
    gh, gw = H // P, W // P
    n_patch = gh * gw

    # conv1 (bias-free patch embedding) as a tiled matmul on unfolded patches.
    patches = img.reshape(B, C, gh, P, gw, P).transpose(0, 2, 4, 1, 3, 5)
    patches = patches.reshape(B, n_patch, C * P * P).astype(COMPUTE_DTYPE)
    x = fused_linear(patches, vp['conv1_w'], jnp.zeros((D,), jnp.float32))   # [B, n_patch, D]
    # hook on visual.conv1 sees NCHW output [B, D, gh, gw]
    feats['conv1'] = x.reshape(B, gh, gw, D).transpose(0, 3, 1, 2)

    cls = jnp.broadcast_to(vp['class_embedding'].reshape(1, 1, D), (B, 1, D)).astype(x.dtype)
    x = jnp.concatenate([cls, x], axis=1)                                    # [B, 1+n_patch, D]
    x = x + vp['pos_embedding'][None, :, :].astype(x.dtype)

    x = layernorm(x, vp['ln_pre_g'], vp['ln_pre_b'])
    feats['ln_pre'] = x

    for i, bp in enumerate(vp['resblocks']):
        x = resblock(x, bp, cfg['vis_heads'], causal=False)   # vision: no mask work at all
        feats[f'transformer.resblocks.{i}'] = x
    feats['transformer'] = x

    x = layernorm(x, vp['ln_post_g'], vp['ln_post_b'])
    feats['ln_post'] = x

    pooled = x[:, 0, :]                                                      # CLS pooling
    out = jnp.dot(pooled.astype(jnp.float32), vp['proj'])                    # [B, embed_dim]
    feats[''] = out                                                          # root visual output
    return out


def encode_text(tokens, tp, cfg, text_feats):
    """tokens: [B, S] int32.  Returns projected text embedding [B, embed_dim]."""
    B, S = tokens.shape

    x = jnp.take(tp['token_embedding'], tokens, axis=0).astype(COMPUTE_DTYPE)   # [B, S, D]
    x = x + tp['pos_embedding'][None, :S, :].astype(x.dtype)

    # hooks are registered on model.transformer.* only
    for i, bp in enumerate(tp['resblocks']):
        x = resblock(x, bp, cfg['txt_heads'], causal=True)    # causal mask built in-kernel
        text_feats[f'resblocks.{i}'] = x
    text_feats[''] = x                                                          # root transformer

    x = layernorm(x, tp['ln_final_g'], tp['ln_final_b'])
    # TODO(synk): EOT pooled at argmax(tokens) — matches open_clip only because EOT has the
    # highest token id in its vocabulary.
    eot = jnp.argmax(tokens, axis=-1)
    pooled = x[jnp.arange(B), eot]
    return jnp.dot(pooled.astype(jnp.float32), tp['text_projection'])


def clip_forward(img, text_tokens, params, cfg):
    """Mirror of CLIPAndTokenizerLayers.forward: returns (img_features, text_features)."""
    img_features = {}
    text_features = {}
    _ = encode_image(img, params['visual'], cfg, img_features)
    if text_tokens is not None:
        _ = encode_text(text_tokens, params['text'], cfg, text_features)
        return img_features, text_features
    return img_features


# ------------------------------ parameter init -------------------------------

def _dense(key, shape, dtype=COMPUTE_DTYPE):
    return (0.02 * jax.random.normal(key, shape, jnp.float32)).astype(dtype)


def _init_resblock(key, width):
    ks = jax.random.split(key, 4)
    f32 = jnp.float32
    return dict(
        ln1_g=jnp.ones((width,), f32), ln1_b=jnp.zeros((width,), f32),
        in_proj_w=_dense(ks[0], (width, 3 * width)), in_proj_b=jnp.zeros((3 * width,), f32),
        out_proj_w=_dense(ks[1], (width, width)), out_proj_b=jnp.zeros((width,), f32),
        ln2_g=jnp.ones((width,), f32), ln2_b=jnp.zeros((width,), f32),
        fc_w=_dense(ks[2], (width, 4 * width)), fc_b=jnp.zeros((4 * width,), f32),
        proj_w=_dense(ks[3], (4 * width, width)), proj_b=jnp.zeros((width,), f32),
    )


def init_params(key, cfg):
    kv, kt = jax.random.split(key)
    f32 = jnp.float32
    P, C, D = cfg['patch'], cfg['in_ch'], cfg['vis_width']
    n_patch = (cfg['image_size'] // P) ** 2

    kvs = jax.random.split(kv, 4 + cfg['vis_layers'])
    visual = dict(
        conv1_w=_dense(kvs[0], (C * P * P, D)),
        class_embedding=_dense(kvs[1], (D,)),
        pos_embedding=_dense(kvs[2], (1 + n_patch, D)),
        ln_pre_g=jnp.ones((D,), f32), ln_pre_b=jnp.zeros((D,), f32),
        ln_post_g=jnp.ones((D,), f32), ln_post_b=jnp.zeros((D,), f32),
        proj=_dense(kvs[3], (D, cfg['embed_dim']), f32),
        resblocks=[_init_resblock(kvs[4 + i], D) for i in range(cfg['vis_layers'])],
    )

    Dt = cfg['txt_width']
    kts = jax.random.split(kt, 3 + cfg['txt_layers'])
    text = dict(
        token_embedding=_dense(kts[0], (cfg['vocab'], Dt)),
        pos_embedding=_dense(kts[1], (cfg['ctx'], Dt)),
        ln_final_g=jnp.ones((Dt,), f32), ln_final_b=jnp.zeros((Dt,), f32),
        text_projection=_dense(kts[2], (Dt, cfg['embed_dim']), f32),
        resblocks=[_init_resblock(kts[3 + i], Dt) for i in range(cfg['txt_layers'])],
    )
    return dict(visual=visual, text=text)


# ----------------------------------- main ------------------------------------

if __name__ == "__main__":
    cfg = dict(
        image_size=16, patch=8, in_ch=3,
        vis_width=32, vis_heads=4, vis_layers=2,
        vocab=64, ctx=8, txt_width=32, txt_heads=4, txt_layers=2,
        embed_dim=16,
    )

    key = jax.random.PRNGKey(0)
    k_params, k_img, k_txt = jax.random.split(key, 3)
    params = init_params(k_params, cfg)

    # NCHW image (stands in for the preprocessed image tensor) and tokenized text.
    img = jax.random.normal(k_img, (2, cfg['in_ch'], cfg['image_size'], cfg['image_size']),
                            jnp.float32)
    text_tokens = jax.random.randint(k_txt, (2, cfg['ctx']), 0, cfg['vocab'], jnp.int32)

    # jit the whole forward so the many per-layer pallas_calls are dispatched as one program.
    forward = jax.jit(lambda im, tok: clip_forward(im, tok, params, cfg))
    img_features, text_features = forward(img, text_tokens)
    jax.block_until_ready((img_features, text_features))
    print("KERNEL_OK")
</pallas_src>

<mosaic_0001>
module attributes {stable_mosaic.version = 11 : i64} {
  func.func @_linear_kernel(%arg0: i32, %arg1: i32, %arg2: i32, %arg3: memref<8x192xbf16, #tpu.memory_space<vmem>>, %arg4: memref<192x32xbf16, #tpu.memory_space<vmem>>, %arg5: memref<1x32xf32, #tpu.memory_space<vmem>>, %arg6: memref<8x32xbf16, #tpu.memory_space<vmem>>) attributes {dimension_semantics = [#tpu.dimension_semantics<parallel>, #tpu.dimension_semantics<parallel>, #tpu.dimension_semantics<arbitrary>], iteration_bounds = array<i64: 1, 1, 1>, scalar_prefetch = 0 : i64, scratch_operands = 0 : i64, tpu.core_type = #tpu.core_type<tc>, window_params = [{transform_indices = @transform_0, window_bounds = array<i64: 8, 192>}, {transform_indices = @transform_1, window_bounds = array<i64: 192, 32>}, {transform_indices = @transform_2, window_bounds = array<i64: 1, 32>}, {transform_indices = @transform_3, window_bounds = array<i64: 8, 32>}]} {
    %c0 = arith.constant 0 : index
    %c0_0 = arith.constant 0 : index
    %0 = vector.load %arg3[%c0, %c0_0] : memref<8x192xbf16, #tpu.memory_space<vmem>>, vector<8x192xbf16>
    %c0_1 = arith.constant 0 : index
    %c0_2 = arith.constant 0 : index
    %1 = vector.load %arg4[%c0_1, %c0_2] : memref<192x32xbf16, #tpu.memory_space<vmem>>, vector<192x32xbf16>
    %cst = arith.constant dense<0.000000e+00> : vector<8x32xf32>
    %2 = tpu.matmul %0, %1, %cst {dimension_numbers = #tpu.dot_dimension_numbers<[1], [0], [0], [1], [0, 0, 1, 1], [], []>} : vector<8x192xbf16>, vector<192x32xbf16>, vector<8x32xf32> -> vector<8x32xf32>
    %c0_3 = arith.constant 0 : index
    %c0_4 = arith.constant 0 : index
    %3 = vector.load %arg5[%c0_3, %c0_4] : memref<1x32xf32, #tpu.memory_space<vmem>>, vector<1x32xf32>
    %4 = vector.broadcast %3 : vector<1x32xf32> to vector<8x32xf32>
    %5 = arith.addf %2, %4 : vector<8x32xf32>
    %6 = arith.truncf %5 : vector<8x32xf32> to vector<8x32xbf16>
    %c0_5 = arith.constant 0 : index
    %c0_6 = arith.constant 0 : index
    %7 = vector.load %arg6[%c0_5, %c0_6] : memref<8x32xbf16, #tpu.memory_space<vmem>>, vector<8x32xbf16>
    tpu.vector_store %arg6[%c0_5, %c0_6], %6 {strides = array<i32>} : memref<8x32xbf16, #tpu.memory_space<vmem>>, vector<8x32xbf16>,
    return
  }
  func.func @transform_0(%arg0: i32, %arg1: i32, %arg2: i32) -> (i32, i32) {
    %c0_i32 = arith.constant 0 : i32
    return %arg0, %arg2 : i32, i32
  }
  func.func @transform_1(%arg0: i32, %arg1: i32, %arg2: i32) -> (i32, i32) {
    %c0_i32 = arith.constant 0 : i32
    return %arg2, %arg1 : i32, i32
  }
  func.func @transform_2(%arg0: i32, %arg1: i32, %arg2: i32) -> (i32, i32) {
    %c0_i32 = arith.constant 0 : i32
    %c0_i32_0 = arith.constant 0 : i32
    return %c0_i32, %arg1 : i32, i32
  }
  func.func @transform_3(%arg0: i32, %arg1: i32, %arg2: i32) -> (i32, i32) {
    %c0_i32 = arith.constant 0 : i32
    return %arg0, %arg1 : i32, i32
  }
}

module attributes {stable_mosaic.version = 11 : i64} {
  func.func @_layernorm_kernel(%arg0: i32, %arg1: memref<16x32xbf16, #tpu.memory_space<vmem>>, %arg2: memref<1x32xf32, #tpu.memory_space<vmem>>, %arg3: memref<1x32xf32, #tpu.memory_space<vmem>>, %arg4: memref<16x32xbf16, #tpu.memory_space<vmem>>) attributes {dimension_semantics = [#tpu.dimension_semantics<parallel>], iteration_bounds = array<i64: 1>, scalar_prefetch = 0 : i64, scratch_operands = 0 : i64, tpu.core_type = #tpu.core_type<tc>, window_params = [{transform_indices = @transform_0, window_bounds = array<i64: 16, 32>}, {pipeline_mode = #tpu.pipeline_mode<synchronous>, transform_indices = @transform_1, window_bounds = array<i64: 1, 32>}, {pipeline_mode = #tpu.pipeline_mode<synchronous>, transform_indices = @transform_2, window_bounds = array<i64: 1, 32>}, {transform_indices = @transform_3, window_bounds = array<i64: 16, 32>}]} {
    %c0 = arith.constant 0 : index
    %c0_0 = arith.constant 0 : index
    %0 = vector.load %arg1[%c0, %c0_0] : memref<16x32xbf16, #tpu.memory_space<vmem>>, vector<16x32xbf16>
    %1 = arith.extf %0 : vector<16x32xbf16> to vector<16x32xf32>
    %cst = arith.constant dense<0.000000e+00> : vector<16xf32>
    %2 = vector.multi_reduction <add>, %1, %cst [1] : vector<16x32xf32> to vector<16xf32>
    %3 = vector.shape_cast %2 : vector<16xf32> to vector<16x1xf32>
    %cst_1 = arith.constant 3.200000e+01 : f32
    %4 = vector.broadcast %cst_1 : f32 to vector<16x1xf32>
    %5 = arith.divf %3, %4 : vector<16x1xf32>
    %6 = vector.broadcast %5 : vector<16x1xf32> to vector<16x32xf32>
    %7 = arith.subf %1, %6 : vector<16x32xf32>
    %8 = arith.mulf %7, %7 : vector<16x32xf32>
    %cst_2 = arith.constant dense<0.000000e+00> : vector<16xf32>
    %9 = vector.multi_reduction <add>, %8, %cst_2 [1] : vector<16x32xf32> to vector<16xf32>
    %10 = vector.shape_cast %9 : vector<16xf32> to vector<16x1xf32>
    %cst_3 = arith.constant 3.200000e+01 : f32
    %11 = vector.broadcast %cst_3 : f32 to vector<16x1xf32>
    %12 = arith.divf %10, %11 : vector<16x1xf32>
    %13 = vector.broadcast %5 : vector<16x1xf32> to vector<16x32xf32>
    %14 = arith.subf %1, %13 : vector<16x32xf32>
    %cst_4 = arith.constant 9.99999974E-6 : f32
    %15 = vector.broadcast %cst_4 : f32 to vector<16x1xf32>
    %16 = arith.addf %12, %15 : vector<16x1xf32>
    %17 = math.rsqrt %16 : vector<16x1xf32>
    %18 = vector.broadcast %17 : vector<16x1xf32> to vector<16x32xf32>
    %19 = arith.mulf %14, %18 : vector<16x32xf32>
    %c0_5 = arith.constant 0 : index
    %c0_6 = arith.constant 0 : index
    %20 = vector.load %arg2[%c0_5, %c0_6] : memref<1x32xf32, #tpu.memory_space<vmem>>, vector<1x32xf32>
    %21 = vector.broadcast %20 : vector<1x32xf32> to vector<16x32xf32>
    %22 = arith.mulf %19, %21 : vector<16x32xf32>
    %c0_7 = arith.constant 0 : index
    %c0_8 = arith.constant 0 : index
    %23 = vector.load %arg3[%c0_7, %c0_8] : memref<1x32xf32, #tpu.memory_space<vmem>>, vector<1x32xf32>
    %24 = vector.broadcast %23 : vector<1x32xf32> to vector<16x32xf32>
    %25 = arith.addf %22, %24 : vector<16x32xf32>
    %26 = arith.truncf %25 : vector<16x32xf32> to vector<16x32xbf16>
    %c0_9 = arith.constant 0 : index
    %c0_10 = arith.constant 0 : index
    %27 = vector.load %arg4[%c0_9, %c0_10] : memref<16x32xbf16, #tpu.memory_space<vmem>>, vector<16x32xbf16>
    tpu.vector_store %arg4[%c0_9, %c0_10], %26 {strides = array<i32>} : memref<16x32xbf16, #tpu.memory_space<vmem>>, vector<16x32xbf16>,
    return
  }
  func.func @transform_0(%arg0: i32) -> (i32, i32) {
    %c0_i32 = arith.constant 0 : i32
    %c0_i32_0 = arith.constant 0 : i32
    return %arg0, %c0_i32 : i32, i32
  }
  func.func @transform_1(%arg0: i32) -> (i32, i32) {
    %c0_i32 = arith.constant 0 : i32
    %c0_i32_0 = arith.constant 0 : i32
    %c0_i32_1 = arith.constant 0 : i32
    return %c0_i32, %c0_i32_0 : i32, i32
  }
  func.func @transform_2(%arg0: i32) -> (i32, i32) {
    %c0_i32 = arith.constant 0 : i32
    %c0_i32_0 = arith.constant 0 : i32
    %c0_i32_1 = arith.constant 0 : i32
    return %c0_i32, %c0_i32_0 : i32, i32
  }
  func.func @transform_3(%arg0: i32) -> (i32, i32) {
    %c0_i32 = arith.constant 0 : i32
    %c0_i32_0 = arith.constant 0 : i32
    return %arg0, %c0_i32 : i32, i32
  }
}

module attributes {stable_mosaic.version = 11 : i64} {
  func.func @_linear_kernel(%arg0: i32, %arg1: i32, %arg2: i32, %arg3: memref<16x32xbf16, #tpu.memory_space<vmem>>, %arg4: memref<32x96xbf16, #tpu.memory_space<vmem>>, %arg5: memref<1x96xf32, #tpu.memory_space<vmem>>, %arg6: memref<1x32xf32, #tpu.memory_space<vmem>>, %arg7: memref<1x32xf32, #tpu.memory_space<vmem>>, %arg8: memref<16x96xbf16, #tpu.memory_space<vmem>>, %arg9: memref<16x32xbf16, #tpu.memory_space<vmem>>) attributes {dimension_semantics = [#tpu.dimension_semantics<parallel>, #tpu.dimension_semantics<arbitrary>, #tpu.dimension_semantics<arbitrary>], iteration_bounds = array<i64: 1, 1, 1>, scalar_prefetch = 0 : i64, scratch_operands = 1 : i64, tpu.core_type = #tpu.core_type<tc>, window_params = [{transform_indices = @transform_0, window_bounds = array<i64: 16, 32>}, {transform_indices = @transform_1, window_bounds = array<i64: 32, 96>}, {transform_indices = @transform_2, window_bounds = array<i64: 1, 96>}, {pipeline_mode = #tpu.pipeline_mode<synchronous>, transform_indices = @transform_3, window_bounds = array<i64: 1, 32>}, {pipeline_mode = #tpu.pipeline_mode<synchronous>, transform_indices = @transform_4, window_bounds = array<i64: 1, 32>}, {transform_indices = @transform_5, window_bounds = array<i64: 16, 96>}]} {
    %c0_i32 = arith.constant 0 : i32
    %0 = arith.cmpi eq, %arg1, %c0_i32 : i32
    %1 = arith.extui %0 : i1 to i32
    %c0_i32_0 = arith.constant 0 : i32
    %2 = arith.cmpi ne, %1, %c0_i32_0 : i32
    scf.if %2 {
      %c0_8 = arith.constant 0 : index
      %c0_9 = arith.constant 0 : index
      %11 = vector.load %arg3[%c0_8, %c0_9] : memref<16x32xbf16, #tpu.memory_space<vmem>>, vector<16x32xbf16>
      %12 = arith.extf %11 : vector<16x32xbf16> to vector<16x32xf32>
      %cst_10 = arith.constant dense<0.000000e+00> : vector<16xf32>
      %13 = vector.multi_reduction <add>, %12, %cst_10 [1] : vector<16x32xf32> to vector<16xf32>
      %14 = vector.shape_cast %13 : vector<16xf32> to vector<16x1xf32>
      %cst_11 = arith.constant 3.200000e+01 : f32
      %15 = vector.broadcast %cst_11 : f32 to vector<16x1xf32>
      %16 = arith.divf %14, %15 : vector<16x1xf32>
      %17 = vector.broadcast %16 : vector<16x1xf32> to vector<16x32xf32>
      %18 = arith.subf %12, %17 : vector<16x32xf32>
      %19 = arith.mulf %18, %18 : vector<16x32xf32>
      %cst_12 = arith.constant dense<0.000000e+00> : vector<16xf32>
      %20 = vector.multi_reduction <add>, %19, %cst_12 [1] : vector<16x32xf32> to vector<16xf32>
      %21 = vector.shape_cast %20 : vector<16xf32> to vector<16x1xf32>
      %cst_13 = arith.constant 3.200000e+01 : f32
      %22 = vector.broadcast %cst_13 : f32 to vector<16x1xf32>
      %23 = arith.divf %21, %22 : vector<16x1xf32>
      %24 = vector.broadcast %16 : vector<16x1xf32> to vector<16x32xf32>
      %25 = arith.subf %12, %24 : vector<16x32xf32>
      %cst_14 = arith.constant 9.99999974E-6 : f32
      %26 = vector.broadcast %cst_14 : f32 to vector<16x1xf32>
      %27 = arith.addf %23, %26 : vector<16x1xf32>
      %28 = math.rsqrt %27 : vector<16x1xf32>
      %29 = vector.broadcast %28 : vector<16x1xf32> to vector<16x32xf32>
      %30 = arith.mulf %25, %29 : vector<16x32xf32>
      %c0_15 = arith.constant 0 : index
      %c0_16 = arith.constant 0 : index
      %31 = vector.load %arg6[%c0_15, %c0_16] : memref<1x32xf32, #tpu.memory_space<vmem>>, vector<1x32xf32>
      %32 = vector.broadcast %31 : vector<1x32xf32> to vector<16x32xf32>
      %33 = arith.mulf %30, %32 : vector<16x32xf32>
      %c0_17 = arith.constant 0 : index
      %c0_18 = arith.constant 0 : index
      %34 = vector.load %arg7[%c0_17, %c0_18] : memref<1x32xf32, #tpu.memory_space<vmem>>, vector<1x32xf32>
      %35 = vector.broadcast %34 : vector<1x32xf32> to vector<16x32xf32>
      %36 = arith.addf %33, %35 : vector<16x32xf32>
      %37 = arith.truncf %36 : vector<16x32xf32> to vector<16x32xbf16>
      %c0_19 = arith.constant 0 : index
      %c0_20 = arith.constant 0 : index
      %38 = vector.load %arg9[%c0_19, %c0_20] : memref<16x32xbf16, #tpu.memory_space<vmem>>, vector<16x32xbf16>
      tpu.vector_store %arg9[%c0_19, %c0_20], %37 {strides = array<i32>} : memref<16x32xbf16, #tpu.memory_space<vmem>>, vector<16x32xbf16>,
    } else {
    }
    %c0 = arith.constant 0 : index
    %c0_1 = arith.constant 0 : index
    %3 = vector.load %arg9[%c0, %c0_1] : memref<16x32xbf16, #tpu.memory_space<vmem>>, vector<16x32xbf16>
    %c0_2 = arith.constant 0 : index
    %c0_3 = arith.constant 0 : index
    %4 = vector.load %arg4[%c0_2, %c0_3] : memref<32x96xbf16, #tpu.memory_space<vmem>>, vector<32x96xbf16>
    %cst = arith.constant dense<0.000000e+00> : vector<16x96xf32>
    %5 = tpu.matmul %3, %4, %cst {dimension_numbers = #tpu.dot_dimension_numbers<[1], [0], [0], [1], [0, 0, 1, 1], [], []>} : vector<16x32xbf16>, vector<32x96xbf16>, vector<16x96xf32> -> vector<16x96xf32>
    %c0_4 = arith.constant 0 : index
    %c0_5 = arith.constant 0 : index
    %6 = vector.load %arg5[%c0_4, %c0_5] : memref<1x96xf32, #tpu.memory_space<vmem>>, vector<1x96xf32>
    %7 = vector.broadcast %6 : vector<1x96xf32> to vector<16x96xf32>
    %8 = arith.addf %5, %7 : vector<16x96xf32>
    %9 = arith.truncf %8 : vector<16x96xf32> to vector<16x96xbf16>
    %c0_6 = arith.constant 0 : index
    %c0_7 = arith.constant 0 : index
    %10 = vector.load %arg8[%c0_6, %c0_7] : memref<16x96xbf16, #tpu.memory_space<vmem>>, vector<16x96xbf16>
    tpu.vector_store %arg8[%c0_6, %c0_7], %9 {strides = array<i32>} : memref<16x96xbf16, #tpu.memory_space<vmem>>, vector<16x96xbf16>,
    return
  }
  func.func @transform_0(%arg0: i32, %arg1: i32, %arg2: i32) -> (i32, i32) {
    %c0_i32 = arith.constant 0 : i32
    return %arg0, %arg2 : i32, i32
  }
  func.func @transform_1(%arg0: i32, %arg1: i32, %arg2: i32) -> (i32, i32) {
    %c0_i32 = arith.constant 0 : i32
    return %arg2, %arg1 : i32, i32
  }
  func.func @transform_2(%arg0: i32, %arg1: i32, %arg2: i32) -> (i32, i32) {
    %c0_i32 = arith.constant 0 : i32
    %c0_i32_0 = arith.constant 0 : i32
    return %c0_i32, %arg1 : i32, i32
  }
  func.func @transform_3(%arg0: i32, %arg1: i32, %arg2: i32) -> (i32, i32) {
    %c0_i32 = arith.constant 0 : i32
    %c0_i32_0 = arith.constant 0 : i32
    %c0_i32_1 = arith.constant 0 : i32
    return %c0_i32, %c0_i32_0 : i32, i32
  }
  func.func @transform_4(%arg0: i32, %arg1: i32, %arg2: i32) -> (i32, i32) {
    %c0_i32 = arith.constant 0 : i32
    %c0_i32_0 = arith.constant 0 : i32
    %c0_i32_1 = arith.constant 0 : i32
    return %c0_i32, %c0_i32_0 : i32, i32
  }
  func.func @transform_5(%arg0: i32, %arg1: i32, %arg2: i32) -> (i32, i32) {
    %c0_i32 = arith.constant 0 : i32
    return %arg0, %arg1 : i32, i32
  }
}

module attributes {stable_mosaic.version = 11 : i64} {
  func.func @_attention_kernel(%arg0: i32, %arg1: memref<1x5x96xbf16, #tpu.memory_space<vmem>>, %arg2: memref<32x32xbf16, #tpu.memory_space<vmem>>, %arg3: memref<1x32xf32, #tpu.memory_space<vmem>>, %arg4: memref<1x5x32xbf16, #tpu.memory_space<vmem>>, %arg5: memref<1x5x32xbf16, #tpu.memory_space<vmem>>, %arg6: memref<5x32xbf16, #tpu.memory_space<vmem>>) attributes {dimension_semantics = [#tpu.dimension_semantics<parallel>], iteration_bounds = array<i64: 2>, scalar_prefetch = 0 : i64, scratch_operands = 1 : i64, tpu.core_type = #tpu.core_type<tc>, window_params = [{transform_indices = @transform_0, window_bounds = array<i64: 1, 5, 96>}, {pipeline_mode = #tpu.pipeline_mode<synchronous>, transform_indices = @transform_1, window_bounds = array<i64: 32, 32>}, {pipeline_mode = #tpu.pipeline_mode<synchronous>, transform_indices = @transform_2, window_bounds = array<i64: 1, 32>}, {transform_indices = @transform_3, window_bounds = array<i64: 1, 5, 32>}, {transform_indices = @transform_4, window_bounds = array<i64: 1, 5, 32>}]} {
    %c0 = arith.constant 0 : index
    %c0_0 = arith.constant 0 : index
    %c0_1 = arith.constant 0 : index
    %0 = vector.load %arg1[%c0, %c0_0, %c0_1] : memref<1x5x96xbf16, #tpu.memory_space<vmem>>, vector<1x5x8xbf16>
    %1 = vector.shape_cast %0 : vector<1x5x8xbf16> to vector<5x8xbf16>
    %c0_2 = arith.constant 0 : index
    %c0_3 = arith.constant 0 : index
    %c32 = arith.constant 32 : index
    %2 = vector.load %arg1[%c0_2, %c0_3, %c32] : memref<1x5x96xbf16, #tpu.memory_space<vmem>>, vector<1x5x8xbf16>
    %3 = vector.shape_cast %2 : vector<1x5x8xbf16> to vector<5x8xbf16>
    %c0_4 = arith.constant 0 : index
    %c0_5 = arith.constant 0 : index
    %c64 = arith.constant 64 : index
    %4 = vector.load %arg1[%c0_4, %c0_5, %c64] : memref<1x5x96xbf16, #tpu.memory_space<vmem>>, vector<1x5x8xbf16>
    %5 = vector.shape_cast %4 : vector<1x5x8xbf16> to vector<5x8xbf16>
    %cst = arith.constant dense<0.000000e+00> : vector<5x5xf32>
    %6 = tpu.matmul %1, %3, %cst {dimension_numbers = #tpu.dot_dimension_numbers<[1], [1], [0], [0], [0, 0, 1, 0], [], []>} : vector<5x8xbf16>, vector<5x8xbf16>, vector<5x5xf32> -> vector<5x5xf32>
    %cst_6 = arith.constant 0.353553385 : f32
    %7 = vector.broadcast %cst_6 : f32 to vector<5x5xf32>
    %8 = arith.mulf %6, %7 : vector<5x5xf32>
    %cst_7 = arith.constant dense<0xFF800000> : vector<5xf32>
    %9 = vector.multi_reduction <maximumf>, %8, %cst_7 [1] : vector<5x5xf32> to vector<5xf32>
    %10 = vector.shape_cast %9 : vector<5xf32> to vector<5x1xf32>
    %11 = vector.broadcast %10 : vector<5x1xf32> to vector<5x5xf32>
    %12 = arith.subf %8, %11 : vector<5x5xf32>
    %13 = math.exp %12 : vector<5x5xf32>
    %cst_8 = arith.constant dense<0.000000e+00> : vector<5xf32>
    %14 = vector.multi_reduction <add>, %13, %cst_8 [1] : vector<5x5xf32> to vector<5xf32>
    %15 = vector.shape_cast %14 : vector<5xf32> to vector<5x1xf32>
    %16 = tpu.reciprocal %15 {approx = true} : vector<5x1xf32> -> vector<5x1xf32>
    %17 = vector.broadcast %16 : vector<5x1xf32> to vector<5x5xf32>
    %18 = arith.mulf %13, %17 : vector<5x5xf32>
    %19 = arith.truncf %18 : vector<5x5xf32> to vector<5x5xbf16>
    %cst_9 = arith.constant dense<0.000000e+00> : vector<5x8xf32>
    %20 = tpu.matmul %19, %5, %cst_9 {dimension_numbers = #tpu.dot_dimension_numbers<[1], [0], [0], [1], [0, 0, 1, 1], [], []>} : vector<5x5xbf16>, vector<5x8xbf16>, vector<5x8xf32> -> vector<5x8xf32>
    %21 = arith.truncf %20 : vector<5x8xf32> to vector<5x8xbf16>
    %c0_10 = arith.constant 0 : index
    %c0_11 = arith.constant 0 : index
    %22 = vector.load %arg6[%c0_10, %c0_11] : memref<5x32xbf16, #tpu.memory_space<vmem>>, vector<5x8xbf16>
    tpu.vector_store %arg6[%c0_10, %c0_11], %21 {strides = array<i32>} : memref<5x32xbf16, #tpu.memory_space<vmem>>, vector<5x8xbf16>,
    %c0_12 = arith.constant 0 : index
    %c0_13 = arith.constant 0 : index
    %c8 = arith.constant 8 : index
    %23 = vector.load %arg1[%c0_12, %c0_13, %c8] : memref<1x5x96xbf16, #tpu.memory_space<vmem>>, vector<1x5x8xbf16>
    %24 = vector.shape_cast %23 : vector<1x5x8xbf16> to vector<5x8xbf16>
    %c0_14 = arith.constant 0 : index
    %c0_15 = arith.constant 0 : index
    %c40 = arith.constant 40 : index
    %25 = vector.load %arg1[%c0_14, %c0_15, %c40] : memref<1x5x96xbf16, #tpu.memory_space<vmem>>, vector<1x5x8xbf16>
    %26 = vector.shape_cast %25 : vector<1x5x8xbf16> to vector<5x8xbf16>
    %c0_16 = arith.constant 0 : index
    %c0_17 = arith.constant 0 : index
    %c72 = arith.constant 72 : index
    %27 = vector.load %arg1[%c0_16, %c0_17, %c72] : memref<1x5x96xbf16, #tpu.memory_space<vmem>>, vector<1x5x8xbf16>
    %28 = vector.shape_cast %27 : vector<1x5x8xbf16> to vector<5x8xbf16>
    %cst_18 = arith.constant dense<0.000000e+00> : vector<5x5xf32>
    %29 = tpu.matmul %24, %26, %cst_18 {dimension_numbers = #tpu.dot_dimension_numbers<[1], [1], [0], [0], [0, 0, 1, 0], [], []>} : vector<5x8xbf16>, vector<5x8xbf16>, vector<5x5xf32> -> vector<5x5xf32>
    %cst_19 = arith.constant 0.353553385 : f32
    %30 = vector.broadcast %cst_19 : f32 to vector<5x5xf32>
    %31 = arith.mulf %29, %30 : vector<5x5xf32>
    %cst_20 = arith.constant dense<0xFF800000> : vector<5xf32>
    %32 = vector.multi_reduction <maximumf>, %31, %cst_20 [1] : vector<5x5xf32> to vector<5xf32>
    %33 = vector.shape_cast %32 : vector<5xf32> to vector<5x1xf32>
    %34 = vector.broadcast %33 : vector<5x1xf32> to vector<5x5xf32>
    %35 = arith.subf %31, %34 : vector<5x5xf32>
    %36 = math.exp %35 : vector<5x5xf32>
    %cst_21 = arith.constant dense<0.000000e+00> : vector<5xf32>
    %37 = vector.multi_reduction <add>, %36, %cst_21 [1] : vector<5x5xf32> to vector<5xf32>
    %38 = vector.shape_cast %37 : vector<5xf32> to vector<5x1xf32>
    %39 = tpu.reciprocal %38 {approx = true} : vector<5x1xf32> -> vector<5x1xf32>
    %40 = vector.broadcast %39 : vector<5x1xf32> to vector<5x5xf32>
    %41 = arith.mulf %36, %40 : vector<5x5xf32>
    %42 = arith.truncf %41 : vector<5x5xf32> to vector<5x5xbf16>
    %cst_22 = arith.constant dense<0.000000e+00> : vector<5x8xf32>
    %43 = tpu.matmul %42, %28, %cst_22 {dimension_numbers = #tpu.dot_dimension_numbers<[1], [0], [0], [1], [0, 0, 1, 1], [], []>} : vector<5x5xbf16>, vector<5x8xbf16>, vector<5x8xf32> -> vector<5x8xf32>
    %44 = arith.truncf %43 : vector<5x8xf32> to vector<5x8xbf16>
    %c0_23 = arith.constant 0 : index
    %c8_24 = arith.constant 8 : index
    %45 = vector.load %arg6[%c0_23, %c8_24] : memref<5x32xbf16, #tpu.memory_space<vmem>>, vector<5x8xbf16>
    tpu.vector_store %arg6[%c0_23, %c8_24], %44 {strides = array<i32>} : memref<5x32xbf16, #tpu.memory_space<vmem>>, vector<5x8xbf16>,
    %c0_25 = arith.constant 0 : index
    %c0_26 = arith.constant 0 : index
    %c16 = arith.constant 16 : index
    %46 = vector.load %arg1[%c0_25, %c0_26, %c16] : memref<1x5x96xbf16, #tpu.memory_space<vmem>>, vector<1x5x8xbf16>
    %47 = vector.shape_cast %46 : vector<1x5x8xbf16> to vector<5x8xbf16>
    %c0_27 = arith.constant 0 : index
    %c0_28 = arith.constant 0 : index
    %c48 = arith.constant 48 : index
    %48 = vector.load %arg1[%c0_27, %c0_28, %c48] : memref<1x5x96xbf16, #tpu.memory_space<vmem>>, vector<1x5x8xbf16>
    %49 = vector.shape_cast %48 : vector<1x5x8xbf16> to vector<5x8xbf16>
    %c0_29 = arith.constant 0 : index
    %c0_30 = arith.constant 0 : index
    %c80 = arith.constant 80 : index
    %50 = vector.load %arg1[%c0_29, %c0_30, %c80] : memref<1x5x96xbf16, #tpu.memory_space<vmem>>, vector<1x5x8xbf16>
    %51 = vector.shape_cast %50 : vector<1x5x8xbf16> to vector<5x8xbf16>
    %cst_31 = arith.constant dense<0.000000e+00> : vector<5x5xf32>
    %52 = tpu.matmul %47, %49, %cst_31 {dimension_numbers = #tpu.dot_dimension_numbers<[1], [1], [0], [0], [0, 0, 1, 0], [], []>} : vector<5x8xbf16>, vector<5x8xbf16>, vector<5x5xf32> -> vector<5x5xf32>
    %cst_32 = arith.constant 0.353553385 : f32
    %53 = vector.broadcast %cst_32 : f32 to vector<5x5xf32>
    %54 = arith.mulf %52, %53 : vector<5x5xf32>
    %cst_33 = arith.constant dense<0xFF800000> : vector<5xf32>
    %55 = vector.multi_reduction <maximumf>, %54, %cst_33 [1] : vector<5x5xf32> to vector<5xf32>
    %56 = vector.shape_cast %55 : vector<5xf32> to vector<5x1xf32>
    %57 = vector.broadcast %56 : vector<5x1xf32> to vector<5x5xf32>
    %58 = arith.subf %54, %57 : vector<5x5xf32>
    %59 = math.exp %58 : vector<5x5xf32>
    %cst_34 = arith.constant dense<0.000000e+00> : vector<5xf32>
    %60 = vector.multi_reduction <add>, %59, %cst_34 [1] : vector<5x5xf32> to vector<5xf32>
    %61 = vector.shape_cast %60 : vector<5xf32> to vector<5x1xf32>
    %62 = tpu.reciprocal %61 {approx = true} : vector<5x1xf32> -> vector<5x1xf32>
    %63 = vector.broadcast %62 : vector<5x1xf32> to vector<5x5xf32>
    %64 = arith.mulf %59, %63 : vector<5x5xf32>
    %65 = arith.truncf %64 : vector<5x5xf32> to vector<5x5xbf16>
    %cst_35 = arith.constant dense<0.000000e+00> : vector<5x8xf32>
    %66 = tpu.matmul %65, %51, %cst_35 {dimension_numbers = #tpu.dot_dimension_numbers<[1], [0], [0], [1], [0, 0, 1, 1], [], []>} : vector<5x5xbf16>, vector<5x8xbf16>, vector<5x8xf32> -> vector<5x8xf32>
    %67 = arith.truncf %66 : vector<5x8xf32> to vector<5x8xbf16>
    %c0_36 = arith.constant 0 : index
    %c16_37 = arith.constant 16 : index
    %68 = vector.load %arg6[%c0_36, %c16_37] : memref<5x32xbf16, #tpu.memory_space<vmem>>, vector<5x8xbf16>
    tpu.vector_store %arg6[%c0_36, %c16_37], %67 {strides = array<i32>} : memref<5x32xbf16, #tpu.memory_space<vmem>>, vector<5x8xbf16>,
    %c0_38 = arith.constant 0 : index
    %c0_39 = arith.constant 0 : index
    %c24 = arith.constant 24 : index
    %69 = vector.load %arg1[%c0_38, %c0_39, %c24] : memref<1x5x96xbf16, #tpu.memory_space<vmem>>, vector<1x5x8xbf16>
    %70 = vector.shape_cast %69 : vector<1x5x8xbf16> to vector<5x8xbf16>
    %c0_40 = arith.constant 0 : index
    %c0_41 = arith.constant 0 : index
    %c56 = arith.constant 56 : index
    %71 = vector.load %arg1[%c0_40, %c0_41, %c56] : memref<1x5x96xbf16, #tpu.memory_space<vmem>>, vector<1x5x8xbf16>
    %72 = vector.shape_cast %71 : vector<1x5x8xbf16> to vector<5x8xbf16>
    %c0_42 = arith.constant 0 : index
    %c0_43 = arith.constant 0 : index
    %c88 = arith.constant 88 : index
    %73 = vector.load %arg1[%c0_42, %c0_43, %c88] : memref<1x5x96xbf16, #tpu.memory_space<vmem>>, vector<1x5x8xbf16>
    %74 = vector.shape_cast %73 : vector<1x5x8xbf16> to vector<5x8xbf16>
    %cst_44 = arith.constant dense<0.000000e+00> : vector<5x5xf32>
    %75 = tpu.matmul %70, %72, %cst_44 {dimension_numbers = #tpu.dot_dimension_numbers<[1], [1], [0], [0], [0, 0, 1, 0], [], []>} : vector<5x8xbf16>, vector<5x8xbf16>, vector<5x5xf32> -> vector<5x5xf32>
    %cst_45 = arith.constant 0.353553385 : f32
    %76 = vector.broadcast %cst_45 : f32 to vector<5x5xf32>
    %77 = arith.mulf %75, %76 : vector<5x5xf32>
    %cst_46 = arith.constant dense<0xFF800000> : vector<5xf32>
    %78 = vector.multi_reduction <maximumf>, %77, %cst_46 [1] : vector<5x5xf32> to vector<5xf32>
    %79 = vector.shape_cast %78 : vector<5xf32> to vector<5x1xf32>
    %80 = vector.broadcast %79 : vector<5x1xf32> to vector<5x5xf32>
    %81 = arith.subf %77, %80 : vector<5x5xf32>
    %82 = math.exp %81 : vector<5x5xf32>
    %cst_47 = arith.constant dense<0.000000e+00> : vector<5xf32>
    %83 = vector.multi_reduction <add>, %82, %cst_47 [1] : vector<5x5xf32> to vector<5xf32>
    %84 = vector.shape_cast %83 : vector<5xf32> to vector<5x1xf32>
    %85 = tpu.reciprocal %84 {approx = true} : vector<5x1xf32> -> vector<5x1xf32>
    %86 = vector.broadcast %85 : vector<5x1xf32> to vector<5x5xf32>
    %87 = arith.mulf %82, %86 : vector<5x5xf32>
    %88 = arith.truncf %87 : vector<5x5xf32> to vector<5x5xbf16>
    %cst_48 = arith.constant dense<0.000000e+00> : vector<5x8xf32>
    %89 = tpu.matmul %88, %74, %cst_48 {dimension_numbers = #tpu.dot_dimension_numbers<[1], [0], [0], [1], [0, 0, 1, 1], [], []>} : vector<5x5xbf16>, vector<5x8xbf16>, vector<5x8xf32> -> vector<5x8xf32>
    %90 = arith.truncf %89 : vector<5x8xf32> to vector<5x8xbf16>
    %c0_49 = arith.constant 0 : index
    %c24_50 = arith.constant 24 : index
    %91 = vector.load %arg6[%c0_49, %c24_50] : memref<5x32xbf16, #tpu.memory_space<vmem>>, vector<5x8xbf16>
    tpu.vector_store %arg6[%c0_49, %c24_50], %90 {strides = array<i32>} : memref<5x32xbf16, #tpu.memory_space<vmem>>, vector<5x8xbf16>,
    %c0_51 = arith.constant 0 : index
    %c0_52 = arith.constant 0 : index
    %92 = vector.load %arg6[%c0_51, %c0_52] : memref<5x32xbf16, #tpu.memory_space<vmem>>, vector<5x32xbf16>
    %c0_53 = arith.constant 0 : index
    %c0_54 = arith.constant 0 : index
    %93 = vector.load %arg2[%c0_53, %c0_54] : memref<32x32xbf16, #tpu.memory_space<vmem>>, vector<32x32xbf16>
    %cst_55 = arith.constant dense<0.000000e+00> : vector<5x32xf32>
    %94 = tpu.matmul %92, %93, %cst_55 {dimension_numbers = #tpu.dot_dimension_numbers<[1], [0], [0], [1], [0, 0, 1, 1], [], []>} : vector<5x32xbf16>, vector<32x32xbf16>, vector<5x32xf32> -> vector<5x32xf32>
    %c0_56 = arith.constant 0 : index
    %c0_57 = arith.constant 0 : index
    %95 = vector.load %arg3[%c0_56, %c0_57] : memref<1x32xf32, #tpu.memory_space<vmem>>, vector<1x32xf32>
    %96 = vector.broadcast %95 : vector<1x32xf32> to vector<5x32xf32>
    %97 = arith.addf %94, %96 : vector<5x32xf32>
    %c0_58 = arith.constant 0 : index
    %c0_59 = arith.constant 0 : index
    %c0_60 = arith.constant 0 : index
    %98 = vector.load %arg4[%c0_58, %c0_59, %c0_60] : memref<1x5x32xbf16, #tpu.memory_space<vmem>>, vector<1x5x32xbf16>
    %99 = vector.shape_cast %98 : vector<1x5x32xbf16> to vector<5x32xbf16>
    %100 = arith.extf %99 : vector<5x32xbf16> to vector<5x32xf32>
    %101 = arith.addf %97, %100 : vector<5x32xf32>
    %102 = arith.truncf %101 : vector<5x32xf32> to vector<5x32xbf16>
    %c0_61 = arith.constant 0 : index
    %c0_62 = arith.constant 0 : index
    %c0_63 = arith.constant 0 : index
    %103 = vector.load %arg5[%c0_61, %c0_62, %c0_63] : memref<1x5x32xbf16, #tpu.memory_space<vmem>>, vector<1x5x32xbf16>
    %104 = vector.shape_cast %103 : vector<1x5x32xbf16> to vector<5x32xbf16>
    %105 = vector.shape_cast %102 : vector<5x32xbf16> to vector<1x5x32xbf16>
    tpu.vector_store %arg5[%c0_61, %c0_62, %c0_63], %105 {strides = array<i32>} : memref<1x5x32xbf16, #tpu.memory_space<vmem>>, vector<1x5x32xbf16>,
    return
  }
  func.func @transform_0(%arg0: i32) -> (i32, i32, i32) {
    %c0_i32 = arith.constant 0 : i32
    %c0_i32_0 = arith.constant 0 : i32
    %c0_i32_1 = arith.constant 0 : i32
    return %arg0, %c0_i32, %c0_i32_0 : i32, i32, i32
  }
  func.func @transform_1(%arg0: i32) -> (i32, i32) {
    %c0_i32 = arith.constant 0 : i32
    %c0_i32_0 = arith.constant 0 : i32
    %c0_i32_1 = arith.constant 0 : i32
    return %c0_i32, %c0_i32_0 : i32, i32
  }
  func.func @transform_2(%arg0: i32) -> (i32, i32) {
    %c0_i32 = arith.constant 0 : i32
    %c0_i32_0 = arith.constant 0 : i32
    %c0_i32_1 = arith.constant 0 : i32
    return %c0_i32, %c0_i32_0 : i32, i32
  }
  func.func @transform_3(%arg0: i32) -> (i32, i32, i32) {
    %c0_i32 = arith.constant 0 : i32
    %c0_i32_0 = arith.constant 0 : i32
    %c0_i32_1 = arith.constant 0 : i32
    return %arg0, %c0_i32, %c0_i32_0 : i32, i32, i32
  }
  func.func @transform_4(%arg0: i32) -> (i32, i32, i32) {
    %c0_i32 = arith.constant 0 : i32
    %c0_i32_0 = arith.constant 0 : i32
    %c0_i32_1 = arith.constant 0 : i32
    return %arg0, %c0_i32, %c0_i32_0 : i32, i32, i32
  }
}

module attributes {stable_mosaic.version = 11 : i64} {
  func.func @_linear_kernel(%arg0: i32, %arg1: i32, %arg2: i32, %arg3: memref<16x32xbf16, #tpu.memory_space<vmem>>, %arg4: memref<32x128xbf16, #tpu.memory_space<vmem>>, %arg5: memref<1x128xf32, #tpu.memory_space<vmem>>, %arg6: memref<1x32xf32, #tpu.memory_space<vmem>>, %arg7: memref<1x32xf32, #tpu.memory_space<vmem>>, %arg8: memref<16x128xbf16, #tpu.memory_space<vmem>>, %arg9: memref<16x32xbf16, #tpu.memory_space<vmem>>) attributes {dimension_semantics = [#tpu.dimension_semantics<parallel>, #tpu.dimension_semantics<arbitrary>, #tpu.dimension_semantics<arbitrary>], iteration_bounds = array<i64: 1, 1, 1>, scalar_prefetch = 0 : i64, scratch_operands = 1 : i64, tpu.core_type = #tpu.core_type<tc>, window_params = [{transform_indices = @transform_0, window_bounds = array<i64: 16, 32>}, {transform_indices = @transform_1, window_bounds = array<i64: 32, 128>}, {transform_indices = @transform_2, window_bounds = array<i64: 1, 128>}, {pipeline_mode = #tpu.pipeline_mode<synchronous>, transform_indices = @transform_3, window_bounds = array<i64: 1, 32>}, {pipeline_mode = #tpu.pipeline_mode<synchronous>, transform_indices = @transform_4, window_bounds = array<i64: 1, 32>}, {transform_indices = @transform_5, window_bounds = array<i64: 16, 128>}]} {
    %c0_i32 = arith.constant 0 : i32
    %0 = arith.cmpi eq, %arg1, %c0_i32 : i32
    %1 = arith.extui %0 : i1 to i32
    %c0_i32_0 = arith.constant 0 : i32
    %2 = arith.cmpi ne, %1, %c0_i32_0 : i32
    scf.if %2 {
      %c0_12 = arith.constant 0 : index
      %c0_13 = arith.constant 0 : index
      %24 = vector.load %arg3[%c0_12, %c0_13] : memref<16x32xbf16, #tpu.memory_space<vmem>>, vector<16x32xbf16>
      %25 = arith.extf %24 : vector<16x32xbf16> to vector<16x32xf32>
      %cst_14 = arith.constant dense<0.000000e+00> : vector<16xf32>
      %26 = vector.multi_reduction <add>, %25, %cst_14 [1] : vector<16x32xf32> to vector<16xf32>
      %27 = vector.shape_cast %26 : vector<16xf32> to vector<16x1xf32>
      %cst_15 = arith.constant 3.200000e+01 : f32
      %28 = vector.broadcast %cst_15 : f32 to vector<16x1xf32>
      %29 = arith.divf %27, %28 : vector<16x1xf32>
      %30 = vector.broadcast %29 : vector<16x1xf32> to vector<16x32xf32>
      %31 = arith.subf %25, %30 : vector<16x32xf32>
      %32 = arith.mulf %31, %31 : vector<16x32xf32>
      %cst_16 = arith.constant dense<0.000000e+00> : vector<16xf32>
      %33 = vector.multi_reduction <add>, %32, %cst_16 [1] : vector<16x32xf32> to vector<16xf32>
      %34 = vector.shape_cast %33 : vector<16xf32> to vector<16x1xf32>
      %cst_17 = arith.constant 3.200000e+01 : f32
      %35 = vector.broadcast %cst_17 : f32 to vector<16x1xf32>
      %36 = arith.divf %34, %35 : vector<16x1xf32>
      %37 = vector.broadcast %29 : vector<16x1xf32> to vector<16x32xf32>
      %38 = arith.subf %25, %37 : vector<16x32xf32>
      %cst_18 = arith.constant 9.99999974E-6 : f32
      %39 = vector.broadcast %cst_18 : f32 to vector<16x1xf32>
      %40 = arith.addf %36, %39 : vector<16x1xf32>
      %41 = math.rsqrt %40 : vector<16x1xf32>
      %42 = vector.broadcast %41 : vector<16x1xf32> to vector<16x32xf32>
      %43 = arith.mulf %38, %42 : vector<16x32xf32>
      %c0_19 = arith.constant 0 : index
      %c0_20 = arith.constant 0 : index
      %44 = vector.load %arg6[%c0_19, %c0_20] : memref<1x32xf32, #tpu.memory_space<vmem>>, vector<1x32xf32>
      %45 = vector.broadcast %44 : vector<1x32xf32> to vector<16x32xf32>
      %46 = arith.mulf %43, %45 : vector<16x32xf32>
      %c0_21 = arith.constant 0 : index
      %c0_22 = arith.constant 0 : index
      %47 = vector.load %arg7[%c0_21, %c0_22] : memref<1x32xf32, #tpu.memory_space<vmem>>, vector<1x32xf32>
      %48 = vector.broadcast %47 : vector<1x32xf32> to vector<16x32xf32>
      %49 = arith.addf %46, %48 : vector<16x32xf32>
      %50 = arith.truncf %49 : vector<16x32xf32> to vector<16x32xbf16>
      %c0_23 = arith.constant 0 : index
      %c0_24 = arith.constant 0 : index
      %51 = vector.load %arg9[%c0_23, %c0_24] : memref<16x32xbf16, #tpu.memory_space<vmem>>, vector<16x32xbf16>
      tpu.vector_store %arg9[%c0_23, %c0_24], %50 {strides = array<i32>} : memref<16x32xbf16, #tpu.memory_space<vmem>>, vector<16x32xbf16>,
    } else {
    }
    %c0 = arith.constant 0 : index
    %c0_1 = arith.constant 0 : index
    %3 = vector.load %arg9[%c0, %c0_1] : memref<16x32xbf16, #tpu.memory_space<vmem>>, vector<16x32xbf16>
    %c0_2 = arith.constant 0 : index
    %c0_3 = arith.constant 0 : index
    %4 = vector.load %arg4[%c0_2, %c0_3] : memref<32x128xbf16, #tpu.memory_space<vmem>>, vector<32x128xbf16>
    %cst = arith.constant dense<0.000000e+00> : vector<16x128xf32>
    %5 = tpu.matmul %3, %4, %cst {dimension_numbers = #tpu.dot_dimension_numbers<[1], [0], [0], [1], [0, 0, 1, 1], [], []>} : vector<16x32xbf16>, vector<32x128xbf16>, vector<16x128xf32> -> vector<16x128xf32>
    %c0_4 = arith.constant 0 : index
    %c0_5 = arith.constant 0 : index
    %6 = vector.load %arg5[%c0_4, %c0_5] : memref<1x128xf32, #tpu.memory_space<vmem>>, vector<1x128xf32>
    %7 = vector.broadcast %6 : vector<1x128xf32> to vector<16x128xf32>
    %8 = arith.addf %5, %7 : vector<16x128xf32>
    %9 = arith.mulf %8, %8 : vector<16x128xf32>
    %10 = arith.mulf %8, %9 : vector<16x128xf32>
    %cst_6 = arith.constant 4.471500e-02 : f32
    %11 = vector.broadcast %cst_6 : f32 to vector<16x128xf32>
    %12 = arith.mulf %11, %10 : vector<16x128xf32>
    %13 = arith.addf %8, %12 : vector<16x128xf32>
    %cst_7 = arith.constant 0.797884583 : f32
    %14 = vector.broadcast %cst_7 : f32 to vector<16x128xf32>
    %15 = arith.mulf %14, %13 : vector<16x128xf32>
    %16 = math.tanh %15 : vector<16x128xf32>
    %cst_8 = arith.constant 1.000000e+00 : f32
    %17 = vector.broadcast %cst_8 : f32 to vector<16x128xf32>
    %18 = arith.addf %17, %16 : vector<16x128xf32>
    %cst_9 = arith.constant 5.000000e-01 : f32
    %19 = vector.broadcast %cst_9 : f32 to vector<16x128xf32>
    %20 = arith.mulf %19, %18 : vector<16x128xf32>
    %21 = arith.mulf %8, %20 : vector<16x128xf32>
    %22 = arith.truncf %21 : vector<16x128xf32> to vector<16x128xbf16>
    %c0_10 = arith.constant 0 : index
    %c0_11 = arith.constant 0 : index
    %23 = vector.load %arg8[%c0_10, %c0_11] : memref<16x128xbf16, #tpu.memory_space<vmem>>, vector<16x128xbf16>
    tpu.vector_store %arg8[%c0_10, %c0_11], %22 {strides = array<i32>} : memref<16x128xbf16, #tpu.memory_space<vmem>>, vector<16x128xbf16>,
    return
  }
  func.func @transform_0(%arg0: i32, %arg1: i32, %arg2: i32) -> (i32, i32) {
    %c0_i32 = arith.constant 0 : i32
    return %arg0, %arg2 : i32, i32
  }
  func.func @transform_1(%arg0: i32, %arg1: i32, %arg2: i32) -> (i32, i32) {
    %c0_i32 = arith.constant 0 : i32
    return %arg2, %arg1 : i32, i32
  }
  func.func @transform_2(%arg0: i32, %arg1: i32, %arg2: i32) -> (i32, i32) {
    %c0_i32 = arith.constant 0 : i32
    %c0_i32_0 = arith.constant 0 : i32
    return %c0_i32, %arg1 : i32, i32
  }
  func.func @transform_3(%arg0: i32, %arg1: i32, %arg2: i32) -> (i32, i32) {
    %c0_i32 = arith.constant 0 : i32
    %c0_i32_0 = arith.constant 0 : i32
    %c0_i32_1 = arith.constant 0 : i32
    return %c0_i32, %c0_i32_0 : i32, i32
  }
  func.func @transform_4(%arg0: i32, %arg1: i32, %arg2: i32) -> (i32, i32) {
    %c0_i32 = arith.constant 0 : i32
    %c0_i32_0 = arith.constant 0 : i32
    %c0_i32_1 = arith.constant 0 : i32
    return %c0_i32, %c0_i32_0 : i32, i32
  }
  func.func @transform_5(%arg0: i32, %arg1: i32, %arg2: i32) -> (i32, i32) {
    %c0_i32 = arith.constant 0 : i32
    return %arg0, %arg1 : i32, i32
  }
}

module attributes {stable_mosaic.version = 11 : i64} {
  func.func @_linear_kernel(%arg0: i32, %arg1: i32, %arg2: i32, %arg3: memref<16x128xbf16, #tpu.memory_space<vmem>>, %arg4: memref<128x32xbf16, #tpu.memory_space<vmem>>, %arg5: memref<1x32xf32, #tpu.memory_space<vmem>>, %arg6: memref<16x32xbf16, #tpu.memory_space<vmem>>, %arg7: memref<16x32xbf16, #tpu.memory_space<vmem>>) attributes {dimension_semantics = [#tpu.dimension_semantics<parallel>, #tpu.dimension_semantics<parallel>, #tpu.dimension_semantics<arbitrary>], iteration_bounds = array<i64: 1, 1, 1>, scalar_prefetch = 0 : i64, scratch_operands = 0 : i64, tpu.core_type = #tpu.core_type<tc>, window_params = [{transform_indices = @transform_0, window_bounds = array<i64: 16, 128>}, {transform_indices = @transform_1, window_bounds = array<i64: 128, 32>}, {transform_indices = @transform_2, window_bounds = array<i64: 1, 32>}, {transform_indices = @transform_3, window_bounds = array<i64: 16, 32>}, {transform_indices = @transform_4, window_bounds = array<i64: 16, 32>}]} {
    %c0 = arith.constant 0 : index
    %c0_0 = arith.constant 0 : index
    %0 = vector.load %arg3[%c0, %c0_0] : memref<16x128xbf16, #tpu.memory_space<vmem>>, vector<16x128xbf16>
    %c0_1 = arith.constant 0 : index
    %c0_2 = arith.constant 0 : index
    %1 = vector.load %arg4[%c0_1, %c0_2] : memref<128x32xbf16, #tpu.memory_space<vmem>>, vector<128x32xbf16>
    %cst = arith.constant dense<0.000000e+00> : vector<16x32xf32>
    %2 = tpu.matmul %0, %1, %cst {dimension_numbers = #tpu.dot_dimension_numbers<[1], [0], [0], [1], [0, 0, 1, 1], [], []>} : vector<16x128xbf16>, vector<128x32xbf16>, vector<16x32xf32> -> vector<16x32xf32>
    %c0_3 = arith.constant 0 : index
    %c0_4 = arith.constant 0 : index
    %3 = vector.load %arg5[%c0_3, %c0_4] : memref<1x32xf32, #tpu.memory_space<vmem>>, vector<1x32xf32>
    %4 = vector.broadcast %3 : vector<1x32xf32> to vector<16x32xf32>
    %5 = arith.addf %2, %4 : vector<16x32xf32>
    %c0_5 = arith.constant 0 : index
    %c0_6 = arith.constant 0 : index
    %6 = vector.load %arg6[%c0_5, %c0_6] : memref<16x32xbf16, #tpu.memory_space<vmem>>, vector<16x32xbf16>
    %7 = arith.extf %6 : vector<16x32xbf16> to vector<16x32xf32>
    %8 = arith.addf %5, %7 : vector<16x32xf32>
    %9 = arith.truncf %8 : vector<16x32xf32> to vector<16x32xbf16>
    %c0_7 = arith.constant 0 : index
    %c0_8 = arith.constant 0 : index
    %10 = vector.load %arg7[%c0_7, %c0_8] : memref<16x32xbf16, #tpu.memory_space<vmem>>, vector<16x32xbf16>
    tpu.vector_store %arg7[%c0_7, %c0_8], %9 {strides = array<i32>} : memref<16x32xbf16, #tpu.memory_space<vmem>>, vector<16x32xbf16>,
    return
  }
  func.func @transform_0(%arg0: i32, %arg1: i32, %arg2: i32) -> (i32, i32) {
    %c0_i32 = arith.constant 0 : i32
    return %arg0, %arg2 : i32, i32
  }
  func.func @transform_1(%arg0: i32, %arg1: i32, %arg2: i32) -> (i32, i32) {
    %c0_i32 = arith.constant 0 : i32
    return %arg2, %arg1 : i32, i32
  }
  func.func @transform_2(%arg0: i32, %arg1: i32, %arg2: i32) -> (i32, i32) {
    %c0_i32 = arith.constant 0 : i32
    %c0_i32_0 = arith.constant 0 : i32
    return %c0_i32, %arg1 : i32, i32
  }
  func.func @transform_3(%arg0: i32, %arg1: i32, %arg2: i32) -> (i32, i32) {
    %c0_i32 = arith.constant 0 : i32
    return %arg0, %arg1 : i32, i32
  }
  func.func @transform_4(%arg0: i32, %arg1: i32, %arg2: i32) -> (i32, i32) {
    %c0_i32 = arith.constant 0 : i32
    return %arg0, %arg1 : i32, i32
  }
}

module attributes {stable_mosaic.version = 11 : i64} {
  func.func @_attention_kernel(%arg0: i32, %arg1: memref<1x8x96xbf16, #tpu.memory_space<vmem>>, %arg2: memref<32x32xbf16, #tpu.memory_space<vmem>>, %arg3: memref<1x32xf32, #tpu.memory_space<vmem>>, %arg4: memref<1x8x32xbf16, #tpu.memory_space<vmem>>, %arg5: memref<1x8x32xbf16, #tpu.memory_space<vmem>>, %arg6: memref<8x32xbf16, #tpu.memory_space<vmem>>) attributes {dimension_semantics = [#tpu.dimension_semantics<parallel>], iteration_bounds = array<i64: 2>, scalar_prefetch = 0 : i64, scratch_operands = 1 : i64, tpu.core_type = #tpu.core_type<tc>, window_params = [{transform_indices = @transform_0, window_bounds = array<i64: 1, 8, 96>}, {pipeline_mode = #tpu.pipeline_mode<synchronous>, transform_indices = @transform_1, window_bounds = array<i64: 32, 32>}, {pipeline_mode = #tpu.pipeline_mode<synchronous>, transform_indices = @transform_2, window_bounds = array<i64: 1, 32>}, {transform_indices = @transform_3, window_bounds = array<i64: 1, 8, 32>}, {transform_indices = @transform_4, window_bounds = array<i64: 1, 8, 32>}]} {
    %0 = tpu.iota {dimensions = array<i32: 0>} : vector<8x8xi32>
    %1 = tpu.iota {dimensions = array<i32: 1>} : vector<8x8xi32>
    %2 = arith.cmpi sgt, %1, %0 : vector<8x8xi32>
    %c0 = arith.constant 0 : index
    %c0_0 = arith.constant 0 : index
    %c0_1 = arith.constant 0 : index
    %3 = vector.load %arg1[%c0, %c0_0, %c0_1] : memref<1x8x96xbf16, #tpu.memory_space<vmem>>, vector<1x8x8xbf16>
    %4 = vector.shape_cast %3 : vector<1x8x8xbf16> to vector<8x8xbf16>
    %c0_2 = arith.constant 0 : index
    %c0_3 = arith.constant 0 : index
    %c32 = arith.constant 32 : index
    %5 = vector.load %arg1[%c0_2, %c0_3, %c32] : memref<1x8x96xbf16, #tpu.memory_space<vmem>>, vector<1x8x8xbf16>
    %6 = vector.shape_cast %5 : vector<1x8x8xbf16> to vector<8x8xbf16>
    %c0_4 = arith.constant 0 : index
    %c0_5 = arith.constant 0 : index
    %c64 = arith.constant 64 : index
    %7 = vector.load %arg1[%c0_4, %c0_5, %c64] : memref<1x8x96xbf16, #tpu.memory_space<vmem>>, vector<1x8x8xbf16>
    %8 = vector.shape_cast %7 : vector<1x8x8xbf16> to vector<8x8xbf16>
    %cst = arith.constant dense<0.000000e+00> : vector<8x8xf32>
    %9 = tpu.matmul %4, %6, %cst {dimension_numbers = #tpu.dot_dimension_numbers<[1], [1], [0], [0], [0, 0, 1, 0], [], []>} : vector<8x8xbf16>, vector<8x8xbf16>, vector<8x8xf32> -> vector<8x8xf32>
    %cst_6 = arith.constant 0.353553385 : f32
    %10 = vector.broadcast %cst_6 : f32 to vector<8x8xf32>
    %11 = arith.mulf %9, %10 : vector<8x8xf32>
    %cst_7 = arith.constant -1.000000e+09 : f32
    %12 = vector.broadcast %cst_7 : f32 to vector<8x8xf32>
    %13 = arith.select %2, %12, %11 : vector<8x8xi1>, vector<8x8xf32>
    %cst_8 = arith.constant dense<0xFF800000> : vector<8xf32>
    %14 = vector.multi_reduction <maximumf>, %13, %cst_8 [1] : vector<8x8xf32> to vector<8xf32>
    %15 = vector.shape_cast %14 : vector<8xf32> to vector<8x1xf32>
    %16 = vector.broadcast %15 : vector<8x1xf32> to vector<8x8xf32>
    %17 = arith.subf %13, %16 : vector<8x8xf32>
    %18 = math.exp %17 : vector<8x8xf32>
    %cst_9 = arith.constant dense<0.000000e+00> : vector<8xf32>
    %19 = vector.multi_reduction <add>, %18, %cst_9 [1] : vector<8x8xf32> to vector<8xf32>
    %20 = vector.shape_cast %19 : vector<8xf32> to vector<8x1xf32>
    %21 = tpu.reciprocal %20 {approx = true} : vector<8x1xf32> -> vector<8x1xf32>
    %22 = vector.broadcast %21 : vector<8x1xf32> to vector<8x8xf32>
    %23 = arith.mulf %18, %22 : vector<8x8xf32>
    %24 = arith.truncf %23 : vector<8x8xf32> to vector<8x8xbf16>
    %cst_10 = arith.constant dense<0.000000e+00> : vector<8x8xf32>
    %25 = tpu.matmul %24, %8, %cst_10 {dimension_numbers = #tpu.dot_dimension_numbers<[1], [0], [0], [1], [0, 0, 1, 1], [], []>} : vector<8x8xbf16>, vector<8x8xbf16>, vector<8x8xf32> -> vector<8x8xf32>
    %26 = arith.truncf %25 : vector<8x8xf32> to vector<8x8xbf16>
    %c0_11 = arith.constant 0 : index
    %c0_12 = arith.constant 0 : index
    %27 = vector.load %arg6[%c0_11, %c0_12] : memref<8x32xbf16, #tpu.memory_space<vmem>>, vector<8x8xbf16>
    tpu.vector_store %arg6[%c0_11, %c0_12], %26 {strides = array<i32>} : memref<8x32xbf16, #tpu.memory_space<vmem>>, vector<8x8xbf16>,
    %c0_13 = arith.constant 0 : index
    %c0_14 = arith.constant 0 : index
    %c8 = arith.constant 8 : index
    %28 = vector.load %arg1[%c0_13, %c0_14, %c8] : memref<1x8x96xbf16, #tpu.memory_space<vmem>>, vector<1x8x8xbf16>
    %29 = vector.shape_cast %28 : vector<1x8x8xbf16> to vector<8x8xbf16>
    %c0_15 = arith.constant 0 : index
    %c0_16 = arith.constant 0 : index
    %c40 = arith.constant 40 : index
    %30 = vector.load %arg1[%c0_15, %c0_16, %c40] : memref<1x8x96xbf16, #tpu.memory_space<vmem>>, vector<1x8x8xbf16>
    %31 = vector.shape_cast %30 : vector<1x8x8xbf16> to vector<8x8xbf16>
    %c0_17 = arith.constant 0 : index
    %c0_18 = arith.constant 0 : index
    %c72 = arith.constant 72 : index
    %32 = vector.load %arg1[%c0_17, %c0_18, %c72] : memref<1x8x96xbf16, #tpu.memory_space<vmem>>, vector<1x8x8xbf16>
    %33 = vector.shape_cast %32 : vector<1x8x8xbf16> to vector<8x8xbf16>
    %cst_19 = arith.constant dense<0.000000e+00> : vector<8x8xf32>
    %34 = tpu.matmul %29, %31, %cst_19 {dimension_numbers = #tpu.dot_dimension_numbers<[1], [1], [0], [0], [0, 0, 1, 0], [], []>} : vector<8x8xbf16>, vector<8x8xbf16>, vector<8x8xf32> -> vector<8x8xf32>
    %cst_20 = arith.constant 0.353553385 : f32
    %35 = vector.broadcast %cst_20 : f32 to vector<8x8xf32>
    %36 = arith.mulf %34, %35 : vector<8x8xf32>
    %cst_21 = arith.constant -1.000000e+09 : f32
    %37 = vector.broadcast %cst_21 : f32 to vector<8x8xf32>
    %38 = arith.select %2, %37, %36 : vector<8x8xi1>, vector<8x8xf32>
    %cst_22 = arith.constant dense<0xFF800000> : vector<8xf32>
    %39 = vector.multi_reduction <maximumf>, %38, %cst_22 [1] : vector<8x8xf32> to vector<8xf32>
    %40 = vector.shape_cast %39 : vector<8xf32> to vector<8x1xf32>
    %41 = vector.broadcast %40 : vector<8x1xf32> to vector<8x8xf32>
    %42 = arith.subf %38, %41 : vector<8x8xf32>
    %43 = math.exp %42 : vector<8x8xf32>
    %cst_23 = arith.constant dense<0.000000e+00> : vector<8xf32>
    %44 = vector.multi_reduction <add>, %43, %cst_23 [1] : vector<8x8xf32> to vector<8xf32>
    %45 = vector.shape_cast %44 : vector<8xf32> to vector<8x1xf32>
    %46 = tpu.reciprocal %45 {approx = true} : vector<8x1xf32> -> vector<8x1xf32>
    %47 = vector.broadcast %46 : vector<8x1xf32> to vector<8x8xf32>
    %48 = arith.mulf %43, %47 : vector<8x8xf32>
    %49 = arith.truncf %48 : vector<8x8xf32> to vector<8x8xbf16>
    %cst_24 = arith.constant dense<0.000000e+00> : vector<8x8xf32>
    %50 = tpu.matmul %49, %33, %cst_24 {dimension_numbers = #tpu.dot_dimension_numbers<[1], [0], [0], [1], [0, 0, 1, 1], [], []>} : vector<8x8xbf16>, vector<8x8xbf16>, vector<8x8xf32> -> vector<8x8xf32>
    %51 = arith.truncf %50 : vector<8x8xf32> to vector<8x8xbf16>
    %c0_25 = arith.constant 0 : index
    %c8_26 = arith.constant 8 : index
    %52 = vector.load %arg6[%c0_25, %c8_26] : memref<8x32xbf16, #tpu.memory_space<vmem>>, vector<8x8xbf16>
    tpu.vector_store %arg6[%c0_25, %c8_26], %51 {strides = array<i32>} : memref<8x32xbf16, #tpu.memory_space<vmem>>, vector<8x8xbf16>,
    %c0_27 = arith.constant 0 : index
    %c0_28 = arith.constant 0 : index
    %c16 = arith.constant 16 : index
    %53 = vector.load %arg1[%c0_27, %c0_28, %c16] : memref<1x8x96xbf16, #tpu.memory_space<vmem>>, vector<1x8x8xbf16>
    %54 = vector.shape_cast %53 : vector<1x8x8xbf16> to vector<8x8xbf16>
    %c0_29 = arith.constant 0 : index
    %c0_30 = arith.constant 0 : index
    %c48 = arith.constant 48 : index
    %55 = vector.load %arg1[%c0_29, %c0_30, %c48] : memref<1x8x96xbf16, #tpu.memory_space<vmem>>, vector<1x8x8xbf16>
    %56 = vector.shape_cast %55 : vector<1x8x8xbf16> to vector<8x8xbf16>
    %c0_31 = arith.constant 0 : index
    %c0_32 = arith.constant 0 : index
    %c80 = arith.constant 80 : index
    %57 = vector.load %arg1[%c0_31, %c0_32, %c80] : memref<1x8x96xbf16, #tpu.memory_space<vmem>>, vector<1x8x8xbf16>
    %58 = vector.shape_cast %57 : vector<1x8x8xbf16> to vector<8x8xbf16>
    %cst_33 = arith.constant dense<0.000000e+00> : vector<8x8xf32>
    %59 = tpu.matmul %54, %56, %cst_33 {dimension_numbers = #tpu.dot_dimension_numbers<[1], [1], [0], [0], [0, 0, 1, 0], [], []>} : vector<8x8xbf16>, vector<8x8xbf16>, vector<8x8xf32> -> vector<8x8xf32>
    %cst_34 = arith.constant 0.353553385 : f32
    %60 = vector.broadcast %cst_34 : f32 to vector<8x8xf32>
    %61 = arith.mulf %59, %60 : vector<8x8xf32>
    %cst_35 = arith.constant -1.000000e+09 : f32
    %62 = vector.broadcast %cst_35 : f32 to vector<8x8xf32>
    %63 = arith.select %2, %62, %61 : vector<8x8xi1>, vector<8x8xf32>
    %cst_36 = arith.constant dense<0xFF800000> : vector<8xf32>
    %64 = vector.multi_reduction <maximumf>, %63, %cst_36 [1] : vector<8x8xf32> to vector<8xf32>
    %65 = vector.shape_cast %64 : vector<8xf32> to vector<8x1xf32>
    %66 = vector.broadcast %65 : vector<8x1xf32> to vector<8x8xf32>
    %67 = arith.subf %63, %66 : vector<8x8xf32>
    %68 = math.exp %67 : vector<8x8xf32>
    %cst_37 = arith.constant dense<0.000000e+00> : vector<8xf32>
    %69 = vector.multi_reduction <add>, %68, %cst_37 [1] : vector<8x8xf32> to vector<8xf32>
    %70 = vector.shape_cast %69 : vector<8xf32> to vector<8x1xf32>
    %71 = tpu.reciprocal %70 {approx = true} : vector<8x1xf32> -> vector<8x1xf32>
    %72 = vector.broadcast %71 : vector<8x1xf32> to vector<8x8xf32>
    %73 = arith.mulf %68, %72 : vector<8x8xf32>
    %74 = arith.truncf %73 : vector<8x8xf32> to vector<8x8xbf16>
    %cst_38 = arith.constant dense<0.000000e+00> : vector<8x8xf32>
    %75 = tpu.matmul %74, %58, %cst_38 {dimension_numbers = #tpu.dot_dimension_numbers<[1], [0], [0], [1], [0, 0, 1, 1], [], []>} : vector<8x8xbf16>, vector<8x8xbf16>, vector<8x8xf32> -> vector<8x8xf32>
    %76 = arith.truncf %75 : vector<8x8xf32> to vector<8x8xbf16>
    %c0_39 = arith.constant 0 : index
    %c16_40 = arith.constant 16 : index
    %77 = vector.load %arg6[%c0_39, %c16_40] : memref<8x32xbf16, #tpu.memory_space<vmem>>, vector<8x8xbf16>
    tpu.vector_store %arg6[%c0_39, %c16_40], %76 {strides = array<i32>} : memref<8x32xbf16, #tpu.memory_space<vmem>>, vector<8x8xbf16>,
    %c0_41 = arith.constant 0 : index
    %c0_42 = arith.constant 0 : index
    %c24 = arith.constant 24 : index
    %78 = vector.load %arg1[%c0_41, %c0_42, %c24] : memref<1x8x96xbf16, #tpu.memory_space<vmem>>, vector<1x8x8xbf16>
    %79 = vector.shape_cast %78 : vector<1x8x8xbf16> to vector<8x8xbf16>
    %c0_43 = arith.constant 0 : index
    %c0_44 = arith.constant 0 : index
    %c56 = arith.constant 56 : index
    %80 = vector.load %arg1[%c0_43, %c0_44, %c56] : memref<1x8x96xbf16, #tpu.memory_space<vmem>>, vector<1x8x8xbf16>
    %81 = vector.shape_cast %80 : vector<1x8x8xbf16> to vector<8x8xbf16>
    %c0_45 = arith.constant 0 : index
    %c0_46 = arith.constant 0 : index
    %c88 = arith.constant 88 : index
    %82 = vector.load %arg1[%c0_45, %c0_46, %c88] : memref<1x8x96xbf16, #tpu.memory_space<vmem>>, vector<1x8x8xbf16>
    %83 = vector.shape_cast %82 : vector<1x8x8xbf16> to vector<8x8xbf16>
    %cst_47 = arith.constant dense<0.000000e+00> : vector<8x8xf32>
    %84 = tpu.matmul %79, %81, %cst_47 {dimension_numbers = #tpu.dot_dimension_numbers<[1], [1], [0], [0], [0, 0, 1, 0], [], []>} : vector<8x8xbf16>, vector<8x8xbf16>, vector<8x8xf32> -> vector<8x8xf32>
    %cst_48 = arith.constant 0.353553385 : f32
    %85 = vector.broadcast %cst_48 : f32 to vector<8x8xf32>
    %86 = arith.mulf %84, %85 : vector<8x8xf32>
    %cst_49 = arith.constant -1.000000e+09 : f32
    %87 = vector.broadcast %cst_49 : f32 to vector<8x8xf32>
    %88 = arith.select %2, %87, %86 : vector<8x8xi1>, vector<8x8xf32>
    %cst_50 = arith.constant dense<0xFF800000> : vector<8xf32>
    %89 = vector.multi_reduction <maximumf>, %88, %cst_50 [1] : vector<8x8xf32> to vector<8xf32>
    %90 = vector.shape_cast %89 : vector<8xf32> to vector<8x1xf32>
    %91 = vector.broadcast %90 : vector<8x1xf32> to vector<8x8xf32>
    %92 = arith.subf %88, %91 : vector<8x8xf32>
    %93 = math.exp %92 : vector<8x8xf32>
    %cst_51 = arith.constant dense<0.000000e+00> : vector<8xf32>
    %94 = vector.multi_reduction <add>, %93, %cst_51 [1] : vector<8x8xf32> to vector<8xf32>
    %95 = vector.shape_cast %94 : vector<8xf32> to vector<8x1xf32>
    %96 = tpu.reciprocal %95 {approx = true} : vector<8x1xf32> -> vector<8x1xf32>
    %97 = vector.broadcast %96 : vector<8x1xf32> to vector<8x8xf32>
    %98 = arith.mulf %93, %97 : vector<8x8xf32>
    %99 = arith.truncf %98 : vector<8x8xf32> to vector<8x8xbf16>
    %cst_52 = arith.constant dense<0.000000e+00> : vector<8x8xf32>
    %100 = tpu.matmul %99, %83, %cst_52 {dimension_numbers = #tpu.dot_dimension_numbers<[1], [0], [0], [1], [0, 0, 1, 1], [], []>} : vector<8x8xbf16>, vector<8x8xbf16>, vector<8x8xf32> -> vector<8x8xf32>
    %101 = arith.truncf %100 : vector<8x8xf32> to vector<8x8xbf16>
    %c0_53 = arith.constant 0 : index
    %c24_54 = arith.constant 24 : index
    %102 = vector.load %arg6[%c0_53, %c24_54] : memref<8x32xbf16, #tpu.memory_space<vmem>>, vector<8x8xbf16>
    tpu.vector_store %arg6[%c0_53, %c24_54], %101 {strides = array<i32>} : memref<8x32xbf16, #tpu.memory_space<vmem>>, vector<8x8xbf16>,
    %c0_55 = arith.constant 0 : index
    %c0_56 = arith.constant 0 : index
    %103 = vector.load %arg6[%c0_55, %c0_56] : memref<8x32xbf16, #tpu.memory_space<vmem>>, vector<8x32xbf16>
    %c0_57 = arith.constant 0 : index
    %c0_58 = arith.constant 0 : index
    %104 = vector.load %arg2[%c0_57, %c0_58] : memref<32x32xbf16, #tpu.memory_space<vmem>>, vector<32x32xbf16>
    %cst_59 = arith.constant dense<0.000000e+00> : vector<8x32xf32>
    %105 = tpu.matmul %103, %104, %cst_59 {dimension_numbers = #tpu.dot_dimension_numbers<[1], [0], [0], [1], [0, 0, 1, 1], [], []>} : vector<8x32xbf16>, vector<32x32xbf16>, vector<8x32xf32> -> vector<8x32xf32>
    %c0_60 = arith.constant 0 : index
    %c0_61 = arith.constant 0 : index
    %106 = vector.load %arg3[%c0_60, %c0_61] : memref<1x32xf32, #tpu.memory_space<vmem>>, vector<1x32xf32>
    %107 = vector.broadcast %106 : vector<1x32xf32> to vector<8x32xf32>
    %108 = arith.addf %105, %107 : vector<8x32xf32>
    %c0_62 = arith.constant 0 : index
    %c0_63 = arith.constant 0 : index
    %c0_64 = arith.constant 0 : index
    %109 = vector.load %arg4[%c0_62, %c0_63, %c0_64] : memref<1x8x32xbf16, #tpu.memory_space<vmem>>, vector<1x8x32xbf16>
    %110 = vector.shape_cast %109 : vector<1x8x32xbf16> to vector<8x32xbf16>
    %111 = arith.extf %110 : vector<8x32xbf16> to vector<8x32xf32>
    %112 = arith.addf %108, %111 : vector<8x32xf32>
    %113 = arith.truncf %112 : vector<8x32xf32> to vector<8x32xbf16>
    %c0_65 = arith.constant 0 : index
    %c0_66 = arith.constant 0 : index
    %c0_67 = arith.constant 0 : index
    %114 = vector.load %arg5[%c0_65, %c0_66, %c0_67] : memref<1x8x32xbf16, #tpu.memory_space<vmem>>, vector<1x8x32xbf16>
    %115 = vector.shape_cast %114 : vector<1x8x32xbf16> to vector<8x32xbf16>
    %116 = vector.shape_cast %113 : vector<8x32xbf16> to vector<1x8x32xbf16>
    tpu.vector_store %arg5[%c0_65, %c0_66, %c0_67], %116 {strides = array<i32>} : memref<1x8x32xbf16, #tpu.memory_space<vmem>>, vector<1x8x32xbf16>,
    return
  }
  func.func @transform_0(%arg0: i32) -> (i32, i32, i32) {
    %c0_i32 = arith.constant 0 : i32
    %c0_i32_0 = arith.constant 0 : i32
    %c0_i32_1 = arith.constant 0 : i32
    return %arg0, %c0_i32, %c0_i32_0 : i32, i32, i32
  }
  func.func @transform_1(%arg0: i32) -> (i32, i32) {
    %c0_i32 = arith.constant 0 : i32
    %c0_i32_0 = arith.constant 0 : i32
    %c0_i32_1 = arith.constant 0 : i32
    return %c0_i32, %c0_i32_0 : i32, i32
  }
  func.func @transform_2(%arg0: i32) -> (i32, i32) {
    %c0_i32 = arith.constant 0 : i32
    %c0_i32_0 = arith.constant 0 : i32
    %c0_i32_1 = arith.constant 0 : i32
    return %c0_i32, %c0_i32_0 : i32, i32
  }
  func.func @transform_3(%arg0: i32) -> (i32, i32, i32) {
    %c0_i32 = arith.constant 0 : i32
    %c0_i32_0 = arith.constant 0 : i32
    %c0_i32_1 = arith.constant 0 : i32
    return %arg0, %c0_i32, %c0_i32_0 : i32, i32, i32
  }
  func.func @transform_4(%arg0: i32) -> (i32, i32, i32) {
    %c0_i32 = arith.constant 0 : i32
    %c0_i32_0 = arith.constant 0 : i32
    %c0_i32_1 = arith.constant 0 : i32
    return %arg0, %c0_i32, %c0_i32_0 : i32, i32, i32
  }
}

</mosaic_0001>

<bundles_post_ra>
// kernel: _lambda_.20
= control target key start
LH: loop header
LB: loop body
LE: loop exit
PB: predicated region body
PF: predicated region fallthrough
CT: control target
= control target key end

     0   :  { %vm18_vm0 = vcmask 261120   ;;  %vm72_vm1 = vcmask 257024   ;;  %s132_s0 = inlined_call_operand.vmem [shape: bf16[16,32], index: 0, kind: input, shape index: {}]   ;;  %s133_s1 = inlined_call_operand.vmem [shape: f32[1,32], index: 1, kind: input, shape index: {}]   ;;  %s134_s2 = inlined_call_operand.vmem [shape: f32[1,32], index: 2, kind: input, shape index: {}]   ;;  %s135_s3 = inlined_call_operand.vmem [shape: bf16[16,32], index: 3, kind: output, shape index: {}]  }
   0x1   :  { %v86_v0 = vld [vmem:[%s132_s0] sm:$0xff]  }
   0x2   :  { %v87_v1 = vunpack.c.l.bf16 %v86_v0  ;;  %v88_v2 = vunpack.c.h.bf16 %v86_v0  ;;  %v79_v22 = vld [vmem:[%s133_s1] ss:$0 sm:$0xff] }
   0x3   :  { %v80_v24 = vld [vmem:[%s134_s2] ss:$0 sm:$0xff] }
   0x4   :  { %v19_v3 = vsel %vm18_vm0, %v87_v1, 0.0  ;;  %v22_v4 = vsel %vm18_vm0, %v88_v2, 0.0 }
   0x5   :  { %20 = vadd.xlane.f32.xlu0 %v19_v3 }
   0x9   :  { %23 = vadd.xlane.f32.xlu0 %v22_v4 }
  0x8e   :  { %v21_v5 = vpop.xlane.xlu0 %20 }
  0x8f   :  { %v26_v6 = vmul.f32 0.03125, %v21_v5 }
  0x91   :  { %v28_v7 = vsub.f32 %v87_v1, %v26_v6 }
  0x92   :  { %v24_v8 = vpop.xlane.xlu0 %23 }
  0x93   :  { %v27_v9 = vmul.f32 0.03125, %v24_v8  ;;  %v30_v10 = vmul.f32 %v28_v7, %v28_v7 }
  0x95   :  { %v29_v11 = vsub.f32 %v88_v2, %v27_v9  ;;  %v32_v12 = vsel %vm18_vm0, %v30_v10, 0.0 }
  0x96   :  { %33 = vadd.xlane.f32.xlu1 %v32_v12 }
  0x97   :  { %v31_v13 = vmul.f32 %v29_v11, %v29_v11 }
  0x99   :  { %v35_v14 = vsel %vm18_vm0, %v31_v13, 0.0 }
  0x9a   :  { %36 = vadd.xlane.f32.xlu1 %v35_v14 }
 0x11f   :  { %v34_v15 = vpop.xlane.xlu1 %33 }
 0x120   :  { %v38_v16 = vmul.f32 0.03125, %v34_v15 }
 0x122   :  { %v40_v17 = vadd.f32 1e-05, %v38_v16 }
 0x123   :  { %v37_v18 = vpop.xlane.xlu1 %36 }
 0x124   :  { %89 = vrsqrt.f32 %v40_v17  ;;  %v39_v19 = vmul.f32 0.03125, %v37_v18 }
 0x126   :  { %v41_v20 = vadd.f32 1e-05, %v39_v19 }
 0x128   :  { %91 = vrsqrt.f32 %v41_v20 }
 0x131   :  { %v90_v21 = vpop.eup %89 }
 0x132   :  { %v44_v23 = vmul.f32 %v90_v21, %v28_v7 }
 0x134   :  { %v53_v25 = vmul.f32 %v79_v22, %v44_v23 }
 0x135   :  { %v92_v26 = vpop.eup %91 }
 0x136   :  { %v62_v27 = vadd.f32 %v80_v24, %v53_v25  ;;  %v45_v28 = vmul.f32 %v92_v26, %v29_v11 }
 0x138   :  { %v83_v29 = vpack.c.bf16 %v62_v27, %v62_v27  ;;  %v54_v30 = vmul.f32 %v79_v22, %v45_v28 }
 0x13a   :  { %73 = vst.msk [vmem:[%s135_s3] sm:$0xf] %vm72_vm1, %v83_v29  ;;  %v63_v31 = vadd.f32 %v80_v24, %v54_v30 }
 0x13c   :  { %v84_v32 = vpack.c.bf16 %v63_v31, %v63_v31 }
 0x13e   :  { %74 = vst.msk [vmem:[%s135_s3 + $0x4] sm:$0xf] %vm72_vm1, %v84_v32 }

// kernel: _lambda_.19
= control target key start
LH: loop header
LB: loop body
LE: loop exit
PB: predicated region body
PF: predicated region fallthrough
CT: control target
= control target key end

     0   :  { %v207_v0 = vmov 0   ;;  %vm125_vm0 = vcmask 523264   ;;  %vm170_vm1 = vcmask 257024   ;;  %s273_s1 = inlined_call_operand.vmem [shape: bf16[192,32], index: 1, kind: input, shape index: {}]   ;;  %s274_s0 = inlined_call_operand.vmem [shape: bf16[8,192], index: 0, kind: input, shape index: {}]   ;;  %s275_s2 = inlined_call_operand.vmem [shape: f32[1,32], index: 2, kind: input, shape index: {}]   ;;  %s276_s3 = inlined_call_operand.vmem [shape: bf16[8,32], index: 3, kind: output, shape index: {}]  }
   0x1   :  { %129 = vmatprep.subr.bf16.mxu0 %v207_v0  ;;  %v193_v1 = vld [vmem:[%s273_s1 + $0x38] sm:$0xff]   ;;  %v194_v2 = vld [vmem:[%s273_s1 + $0x30] sm:$0xff]   ;;  %v195_v3 = vld [vmem:[%s273_s1 + $0x28] sm:$0xff]  }
   0x2   :  { %130 = vmatpush1.bf16.msra.mxu0 %v193_v1  ;;  %v196_v4 = vld [vmem:[%s273_s1 + $0x20] sm:$0xff]   ;;  %v197_v7 = vld [vmem:[%s273_s1 + $0x18] sm:$0xff]   ;;  %v198_v8 = vld [vmem:[%s273_s1 + $0x10] sm:$0xff]  }
   0x3   :  { %131 = vmatprep.subr.bf16.mxu0 %v207_v0  ;;  %v15_v5 = vld [vmem:[%s274_s0] sm:$0xff]  ;;  %v199_v9 = vld [vmem:[%s273_s1 + $0x8] sm:$0xff]   ;;  %v201_v11 = vld [vmem:[%s273_s1 + $0x58] sm:$0xff]  }
   0x4   :  { %v178_v6 = vcombine.high %v15_v5, %v15_v5  ;;  %v200_v10 = vld [vmem:[%s273_s1] sm:$0xff]   ;;  %v202_v12 = vld [vmem:[%s273_s1 + $0x50] sm:$0xff]   ;;  %v203_v13 = vld [vmem:[%s273_s1 + $0x48] sm:$0xff]   ;;  %v177_v15 = vcombine.low %v15_v5, %v15_v5 }
   0x5   :  { %v204_v14 = vld [vmem:[%s273_s1 + $0x40] sm:$0xff]  }
   0x6   :  { %132 = vmatpush1.bf16.msra.mxu0 %v194_v2  ;;  %191 = vmatprep.mubr.msk.bf16.mxu0 %vm125_vm0, %v178_v6  ;;  %v176_v16 = vld [vmem:[%s275_s2] ss:$0 sm:$0xff] }
   0x7   :  { %133 = vmatprep.subr.bf16.mxu0 %v207_v0 }
   0xa   :  { %134 = vmatpush1.bf16.msra.mxu0 %v195_v3 }
   0xb   :  { %135 = vmatprep.subr.bf16.mxu0 %v207_v0 }
   0xe   :  { %136 = vmatpush1.bf16.msra.mxu0 %v196_v4 }
   0xf   :  { %137 = vmatprep.subr.bf16.mxu0 %v207_v0 }
  0x12   :  { %138 = vmatpush1.bf16.msra.mxu0 %v197_v7 }
  0x13   :  { %139 = vmatprep.subr.bf16.mxu0 %v207_v0 }
  0x16   :  { %140 = vmatpush1.bf16.msra.mxu0 %v198_v8 }
  0x17   :  { %141 = vmatprep.subr.bf16.mxu0 %v207_v0 }
  0x1a   :  { %142 = vmatpush1.bf16.msra.mxu0 %v199_v9 }
  0x1b   :  { %143 = vmatprep.subr.bf16.mxu0 %v207_v0 }
  0x1e   :  { %144 = vmatpush1.bf16.msra.mxu0 %v200_v10 }
  0x1f   :  { %153 = vmatprep.subr.bf16.mxu0 %v207_v0 }
  0x22   :  { %154 = vmatpush2.bf16.msra.mxu0 %v201_v11 }
  0x23   :  { %155 = vmatprep.subr.bf16.mxu0 %v207_v0 }
  0x26   :  { %156 = vmatpush2.bf16.msra.mxu0 %v202_v12 }
  0x27   :  { %157 = vmatprep.subr.bf16.mxu0 %v207_v0 }
  0x2a   :  { %158 = vmatpush2.bf16.msra.mxu0 %v203_v13 }
  0x2b   :  { %159 = vmatprep.subr.bf16.mxu0 %v207_v0 }
  0x2e   :  { %160 = vmatpush2.bf16.msra.mxu0 %v204_v14 }
  0x31   :  { %162 = vmatmul.mubr.bf16.vlgmr.msra.gmra.mxu0 %v177_v15 }
  0xf1   :  { %v163_v17 = vpop.f32.mrf.mxu0 }
  0xf2   :  { %v164_v18 = vadd.f32 %v176_v16, %v163_v17 }
  0xf3   :  { %v165_v19 = vpop.f32.mrf.mxu0 }
  0xf4   :  { %v169_v20 = vpack.c.bf16 %v164_v18, %v164_v18 }
  0xf5   :  { %v166_v21 = vpop.f32.mrf.mxu0 }
  0xf6   :  { %171 = vst.msk [vmem:[%s276_s3] sm:$0xf] %vm170_vm1, %v169_v20 }
  0xf7   :  { %v167_v22 = vpop.f32.mrf.mxu0 }

// kernel: _lambda_.21
= control target key start
LH: loop header
LB: loop body
LE: loop exit
PB: predicated region body
PF: predicated region fallthrough
CT: control target
= control target key end

     0   :  { %vm29_vm0 = vcmask 261120   ;;  %v215_v16 = vmov 0.0   ;;  %vm216_vm1 = vmmov 0   ;;  %vm83_vm2 = vcmask 257024   ;;  %s276_s0 = inlined_call_operand.vmem [shape: bf16[16,32], index: 0, kind: input, shape index: {}]   ;;  %s277_s1 = inlined_call_operand.vmem [shape: bf16[32,96], index: 1, kind: input, shape index: {}]   ;;  %s278_s3 = inlined_call_operand.vmem [shape: f32[1,32], index: 3, kind: input, shape index: {}]   ;;  %s279_s4 = inlined_call_operand.vmem [shape: f32[1,32], index: 4, kind: input, shape index: {}]   ;;  %s280_s2 = inlined_call_operand.vmem [shape: f32[1,96], index: 2, kind: input, shape index: {}]   ;;  %s281_s5 = inlined_call_operand.vmem [shape: bf16[16,96], index: 5, kind: output, shape index: {}]  }
   0x1   :  { %v192_v0 = vld [vmem:[%s276_s0] sm:$0xff]   ;;  %v208_v15 = vld [vmem:[%s277_s1 + $0x8] sm:$0xff]   ;;  %198 = vmatprep.subr.bf16.mxu0 %v215_v16  ;;  %202 = vmatprep.mubr.msk.bf16.mxu0 %vm216_vm1, %v215_v16  ;;  %vm169_vm3 = vcmask 781312  }
   0x2   :  { %v193_v1 = vunpack.c.l.bf16 %v192_v0  ;;  %v194_v2 = vunpack.c.h.bf16 %v192_v0  ;;  %199 = vmatpush3.bf16.msra.mxu0 %v208_v15  ;;  %v209_v17 = vld [vmem:[%s277_s1] sm:$0xff]  }
   0x3   :  { %200 = vmatprep.subr.bf16.mxu0 %v215_v16  ;;  %v176_v25 = vld [vmem:[%s278_s3] ss:$0 sm:$0xff] }
   0x4   :  { %v30_v3 = vsel %vm29_vm0, %v193_v1, 0.0  ;;  %v33_v4 = vsel %vm29_vm0, %v194_v2, 0.0  ;;  %v177_v27 = vld [vmem:[%s279_s4] ss:$0 sm:$0xff] }
   0x5   :  { %31 = vadd.xlane.f32.xlu0 %v30_v3  ;;  %v180_v37 = vld [vmem:[%s280_s2] ss:$0 sm:$0xff] }
   0x6   :  { %201 = vmatpush3.bf16.msra.mxu0 %v209_v17 }
   0x9   :  { %34 = vadd.xlane.f32.xlu0 %v33_v4 }
  0x8e   :  { %v32_v5 = vpop.xlane.xlu0 %31 }
  0x8f   :  { %v37_v6 = vmul.f32 0.03125, %v32_v5 }
  0x91   :  { %v39_v7 = vsub.f32 %v193_v1, %v37_v6 }
  0x92   :  { %v35_v8 = vpop.xlane.xlu0 %34 }
  0x93   :  { %v38_v9 = vmul.f32 0.03125, %v35_v8  ;;  %v41_v10 = vmul.f32 %v39_v7, %v39_v7 }
  0x95   :  { %v40_v11 = vsub.f32 %v194_v2, %v38_v9  ;;  %v43_v12 = vsel %vm29_vm0, %v41_v10, 0.0 }
  0x96   :  { %44 = vadd.xlane.f32.xlu1 %v43_v12 }
  0x97   :  { %v42_v13 = vmul.f32 %v40_v11, %v40_v11 }
  0x99   :  { %v46_v14 = vsel %vm29_vm0, %v42_v13, 0.0 }
  0x9a   :  { %47 = vadd.xlane.f32.xlu1 %v46_v14 }
 0x11f   :  { %v45_v18 = vpop.xlane.xlu1 %44 }
 0x120   :  { %v49_v19 = vmul.f32 0.03125, %v45_v18 }
 0x122   :  { %v51_v20 = vadd.f32 1e-05, %v49_v19 }
 0x123   :  { %v48_v21 = vpop.xlane.xlu1 %47 }
 0x124   :  { %211 = vrsqrt.f32 %v51_v20  ;;  %v50_v22 = vmul.f32 0.03125, %v48_v21 }
 0x126   :  { %v52_v23 = vadd.f32 1e-05, %v50_v22 }
 0x128   :  { %213 = vrsqrt.f32 %v52_v23 }
 0x131   :  { %v212_v24 = vpop.eup %211 }
 0x132   :  { %v55_v26 = vmul.f32 %v212_v24, %v39_v7 }
 0x134   :  { %v64_v28 = vmul.f32 %v176_v25, %v55_v26 }
 0x135   :  { %v214_v29 = vpop.eup %213 }
 0x136   :  { %v73_v30 = vadd.f32 %v177_v27, %v64_v28  ;;  %v56_v31 = vmul.f32 %v214_v29, %v40_v11 }
 0x138   :  { %v187_v32 = vpack.c.bf16 %v73_v30, %v73_v30  ;;  %v65_v33 = vmul.f32 %v176_v25, %v56_v31 }
 0x13a   :  { %84 = vst.msk [vmem:[#allocation2] sm:$0xf] %vm83_vm2, %v187_v32  ;;  %v74_v34 = vadd.f32 %v177_v27, %v65_v33 }
 0x13c   :  { %v188_v35 = vpack.c.bf16 %v74_v34, %v74_v34 }
 0x13e   :  { %85 = vst.msk [vmem:[#allocation2 + $0x4] sm:$0xf] %vm83_vm2, %v188_v35 }
 0x145   :  { %v210_v36 = vld [vmem:[#allocation2] sm:$0xff]  }
 0x146   :  { %203 = vmatmul.mubr.msk.bf16.vlgmr.msra.gmra.mxu0 %vm29_vm0, %v210_v36 }
 0x206   :  { %v154_v38 = vpop.f32.mrf.mxu0 }
 0x207   :  { %v155_v39 = vadd.f32 %v180_v37, %v154_v38 }
 0x208   :  { %v204_v40 = vpop.f32.mrf.mxu0 }
 0x209   :  { %v189_v41 = vpack.c.bf16 %v155_v39, %v155_v39 }
 0x20a   :  { %v157_v42 = vpop.f32.mrf.mxu0 }
 0x20b   :  { %170 = vst.msk [vmem:[%s281_s5] sm:$0xf] %vm169_vm3, %v189_v41  ;;  %v158_v43 = vadd.f32 %v180_v37, %v157_v42 }
 0x20c   :  { %v205_v44 = vpop.f32.mrf.mxu0 }
 0x20d   :  { %v190_v45 = vpack.c.bf16 %v158_v43, %v158_v43 }
 0x20f   :  { %171 = vst.msk [vmem:[%s281_s5 + $0x4] sm:$0xf] %vm169_vm3, %v190_v45 }

// kernel: _lambda_.22
= control target key start
LH: loop header
LB: loop body
LE: loop exit
PB: predicated region body
PF: predicated region fallthrough
CT: control target
= control target key end

     0   :  { %s1065_s15 = smov 0   ;;  %s1179_s0 = inlined_call_operand.vmem [shape: bf16[2,5,96], index: 0, kind: input, shape index: {}]   ;;  %s1180_s1 = inlined_call_operand.vmem [shape: bf16[32,32], index: 1, kind: input, shape index: {}]   ;;  %s1181_s2 = inlined_call_operand.vmem [shape: f32[1,32], index: 2, kind: input, shape index: {}]   ;;  %s1182_s3 = inlined_call_operand.vmem [shape: bf16[2,5,32], index: 3, kind: input, shape index: {}]   ;;  %s1183_s4 = inlined_call_operand.vmem [shape: bf16[2,5,32], index: 4, kind: output, shape index: {}]  }
   0x1 LB: > { %s861_s16 = sadd.s32 4294967295, %s1021_s15   ;;  %p865_p0 = scmp.ge.s32.totalorder %s1021_s15, 1  ;;  %s1021_s15 = sphi %s1065_s15, %s14_s15  }
   0x2   : > { %p170_p1 = scmp.lt.s32.totalorder %s1021_s15, 3 }
   0x4   : > { %p171_p2 = pnand %p865_p0, %p170_p1 }
   0x5   : > { %p198_p3 = scmp.lt.s32.totalorder (!%p171_p2), %s861_s16, 1  ;;  %s1025_s21 = smov (!%p171_p2), 96  }
   0x6   : > { %174 = sbr.rel (%p171_p2) target bundleno = 1748 (0x6d4), region = 36  ;;  %s1026_s22 = smov (!%p171_p2), 64  }
   0x7   : > { %s1027_s23 = smov (!%p171_p2), 88   ;;  %s1028_s24 = smov (!%p171_p2), 72  }
   0x8   : > { %s1030_s25 = smov (!%p171_p2), 120   ;;  %s1031_s26 = smov (!%p171_p2), 80  }
   0x9   : > { %s1032_s27 = smov (!%p171_p2), 112   ;;  %s1033_s28 = smov (!%p171_p2), 104  }
   0xa   : > { %s1034_s29 = smov (!%p171_p2), 56   ;;  %s1035_s30 = smov (!%p171_p2), 48  }
   0xb   : > { %v1023_v0 = vmov 0.0   ;;  %vm1024_vm0 = vmmov 0   ;;  %s1185_s16 = smov (!%p198_p3, %s861_s16), 1  ;;  %vm217_vm1 = vcmask 64512   ;;  %vm265_vm2 = vcmask 36864   ;;  %s1036_s5 = smov 40  }
   0xc   : > { %912 = vmatprep.subr.bf16.mxu0 %v1023_v0  ;;  %914 = vmatprep.mubr.msk.bf16.mxu0 %vm1024_vm0, %v1023_v0  ;;  %s1079_s17 = sshll.u32 %s1185_s16, 2  ;;  %vm284_vm3 = vcmask 1041408   ;;  %vm285_vm4 = vcmask 1042432   ;;  %v1029_v14 = vmov 65535   ;;  %vm280_vm5 = vcmask 39936   ;;  %s1037_s6 = smov 8  }
   0xd   : > { %918 = vmatprep.subr.bf16.mxu1 %v1023_v0  ;;  %920 = vmatprep.mubr.msk.bf16.mxu1 %vm1024_vm0, %v1023_v0  ;;  %s1085_s20 = scalar_lea.vmem %s1179_s0, %s1079_s17  ;;  %v286_v15 = vsel %vm284_vm3, 4294967295, %v1029_v14  ;;  %vm332_vm6 = vcmask 59392   ;;  %vm333_vm7 = vsmask.f32 2304  ;;  %v335_v38 = vld [vmem:[#allocation2] sm:$0x7]  ;;  %s205_s16 = scalar_lea.vmem %s1182_s3, %s1079_s17 }
   0xe   : > { %v211_v1 = vld [vmem:[%s1085_s20] sm:$0x7]  ;;  %v1102_v16 = vsel %vm285_vm4, %v286_v15, 0  ;;  %vm334_vm8 = vmand %vm332_vm6, %vm333_vm7  ;;  %s1038_s11 = smov 16   ;;  %s1039_s12 = smov 24   ;;  %vm460_vm9 = vcmask 124992  }
   0xf   : > { %v869_v2 = vcombine.low %v211_v1, %v211_v1  ;;  %v1094_v5 = vld [vmem:[%s1085_s20] ss:$0 sps:$4 sm:$0x77]   ;;  %vm461_vm10 = vmand %vm460_vm9, %vm333_vm7  ;;  %vm587_vm11 = vcmask 190592   ;;  %vm714_vm13 = vcmask 256192   ;;  %vm743_vm15 = vcmask 261120  }
  0x10   : > { %v1099_v12 = vld [vmem:[%s1085_s20] ss:$0 sps:$4 sm:$0x77]   ;;  %vm588_vm12 = vmand %vm587_vm11, %vm333_vm7 }
  0x11   : > { %215 = vrot.lane.b32.xlu0 %v869_v2, %s1025_s21  ;;  %278 = vrot.lane.b32.xlu1 %v869_v2, %s1026_s22  ;;  %v1109_v23 = vld [vmem:[%s1085_s20] ss:$0 sps:$4 sm:$0x77]   ;;  %vm715_vm14 = vmand %vm714_vm13, %vm333_vm7  ;;  %s209_s22 = scalar_lea.vmem %s1183_s4, %s1079_s17 }
  0x15   : > { %344 = vrot.lane.b32.xlu1 %v1094_v5, %s1027_s23 }
  0x83   : > { %v216_v3 = vpop.permute.xlu0 %215  ;;  %v279_v13 = vpop.permute.xlu1 %278 }
  0x84   : > { %v222_v4 = vsel %vm217_vm1, %v216_v3, 0  ;;  %v289_v17 = vand.u32 %v1102_v16, %v279_v13 }
  0x85   : > { %913 = vmatpush3.bf16.xpose.msra.mxu0 %v222_v4 }
  0x86   : > { %930 = vmatprep.subr.bf16.mxu0 %v1023_v0  ;;  %919 = vmatpush3.bf16.msra.mxu1 %v289_v17 }
  0x87   : > { %924 = vmatprep.subr.bf16.mxu1 %v1023_v0  ;;  %v345_v24 = vpop.permute.xlu1 %344 }
  0x88   : > { %v350_v30 = vsel %vm217_vm1, %v345_v24, 0 }
  0x8c   : > { %915 = vmatmul.mubr.msk.bf16.vlgmr.msra.gmra.mxu0 %vm217_vm1, %v211_v1 }
  0x8d   : > { %932 = vmatprep.mubr.msk.bf16.mxu0 %vm1024_vm0, %v1023_v0 }
 0x14c   : > { %v258_v6 = vpop.f32.mrf.mxu0 }
 0x14d   : > { %v264_v7 = vmul.f32 0.35355338, %v258_v6 }
 0x14e   : > { %v916_v8 = vpop.f32.mrf.mxu0 }
 0x14f   : > { %v266_v9 = vsel %vm265_vm2, %v264_v7, -inf }
 0x150   : > { %267 = vmax.xlane.f32.xlu0 %v266_v9  ;;  %v261_v10 = vpop.f32.mrf.mxu0 }
 0x152   : > { %v917_v11 = vpop.f32.mrf.mxu0 }
 0x166   : > { %598 = vrot.lane.b32.xlu0 %v1099_v12, %s1028_s24 }
 0x1d9   : > { %v268_v18 = vpop.xlane.xlu0 %267 }
 0x1da   : > { %v269_v19 = vsub.f32 %v264_v7, %v268_v18 }
 0x1dc   : > { %v270_v20 = vmul.f32 1.442695, %v269_v19 }
 0x1dd   : > { %v599_v33 = vpop.permute.xlu0 %598 }
 0x1de   : > { %999 = vpow2.f32 %v270_v20  ;;  %v604_v35 = vsel %vm217_vm1, %v599_v33, 0 }
 0x1eb   : > { %v1000_v21 = vpop.eup %999 }
 0x1ec   : > { %v272_v22 = vsel %vm265_vm2, %v1000_v21, 0.0 }
 0x1ed   : > { %273 = vadd.xlane.f32.xlu1 %v272_v22 }
 0x1fe   : > { %342 = vrot.lane.b32.xlu1 %v1094_v5, %s1030_s25 }
 0x202   : > { %471 = vrot.lane.b32.xlu1 %v1109_v23, %s1031_s26 }
 0x206   : > { %469 = vrot.lane.b32.xlu1 %v1109_v23, %s1032_s27 }
 0x20a   : > { %596 = vrot.lane.b32.xlu1 %v1099_v12, %s1033_s28 }
 0x276   : > { %v274_v25 = vpop.xlane.xlu1 %273 }
 0x277   : > { %1001 = vrcp.f32 %v274_v25 }
 0x27a   : > { %v343_v28 = vpop.permute.xlu1 %342 }
 0x27e   : > { %v472_v31 = vpop.permute.xlu1 %471 }
 0x27f   : > { %v477_v32 = vsel %vm217_vm1, %v472_v31, 0 }
 0x282   : > { %v470_v34 = vpop.permute.xlu1 %469 }
 0x284   : > { %v1002_v26 = vpop.eup %1001 }
 0x285   : > { %v276_v27 = vmul.f32 %v1002_v26, %v1000_v21 }
 0x286   : > { %v597_v36 = vpop.permute.xlu1 %596 }
 0x287   : > { %v277_v29 = vpack.c.bf16 %v276_v27, %v276_v27 }
 0x289   : > { %921 = vmatmul.mubr.msk.bf16.vlgmr.msra.gmra.mxu1 %vm280_vm5, %v277_v29 }
 0x28a   : > { %925 = vmatpush3.bf16.xpose.msra.mxu1 %v350_v30  ;;  %926 = vmatprep.mubr.msk.bf16.mxu1 %vm1024_vm0, %v1023_v0 }
 0x28b   : > { %936 = vmatprep.subr.bf16.mxu1 %v1023_v0 }
 0x291   : > { %927 = vmatmul.mubr.msk.bf16.vlgmr.msra.gmra.mxu1 %vm217_vm1, %v343_v28 }
 0x292   : > { %937 = vmatpush3.bf16.xpose.msra.mxu1 %v477_v32  ;;  %938 = vmatprep.mubr.msk.bf16.mxu1 %vm1024_vm0, %v1023_v0 }
 0x293   : > { %948 = vmatprep.subr.bf16.mxu1 %v1023_v0 }
 0x299   : > { %939 = vmatmul.mubr.msk.bf16.vlgmr.msra.gmra.mxu1 %vm217_vm1, %v470_v34 }
 0x29a   : > { %949 = vmatpush3.bf16.xpose.msra.mxu1 %v604_v35  ;;  %950 = vmatprep.mubr.msk.bf16.mxu1 %vm1024_vm0, %v1023_v0 }
 0x29b   : > { %960 = vmatprep.subr.bf16.mxu1 %v1023_v0 }
 0x2a1   : > { %951 = vmatmul.mubr.msk.bf16.vlgmr.msra.gmra.mxu1 %vm217_vm1, %v597_v36 }
 0x2a2   : > { %964 = vmatprep.mubr.msk.bf16.mxu1 %vm1024_vm0, %v1023_v0 }
 0x349   : > { %v325_v37 = vpop.f32.mrf.mxu1 }
 0x34a   : > { %v331_v39 = vpack.c.bf16 %v325_v37, %v325_v37 }
 0x34b   : > { %v922_v40 = vpop.f32.mrf.mxu1 }
 0x34c   : > { %v336_v41 = vsel %vm334_vm8, %v331_v39, %v335_v38  ;;  %v997_v38 = vld [vmem:[%s1180_s1 + $0x8] sm:$0xff]  }
 0x34d   : > { %337 = vst [vmem:[#allocation2] sm:$0x7] %v336_v41  ;;  %v328_v42 = vpop.f32.mrf.mxu1  ;;  %961 = vmatpush3.bf16.msra.mxu1 %v997_v38  ;;  %v998_v41 = vld [vmem:[%s1180_s1] sm:$0xff]  }
 0x34e   : > { %962 = vmatprep.subr.bf16.mxu1 %v1023_v0 }
 0x34f   : > { %v923_v43 = vpop.f32.mrf.mxu1 }
 0x351   : > { %v386_v44 = vpop.f32.mrf.mxu1  ;;  %963 = vmatpush3.bf16.msra.mxu1 %v998_v41 }
 0x352   : > { %v392_v45 = vmul.f32 0.35355338, %v386_v44 }
 0x353   : > { %v928_v46 = vpop.f32.mrf.mxu1 }
 0x354   : > { %v393_v47 = vsel %vm265_vm2, %v392_v45, -inf }
 0x355   : > { %394 = vmax.xlane.f32.xlu1 %v393_v47  ;;  %v389_v48 = vpop.f32.mrf.mxu1 }
 0x357   : > { %v929_v49 = vpop.f32.mrf.mxu1 }
 0x358   : > { %v462_v49 = vld [vmem:[#allocation2] sm:$0x7] }
 0x359   : > { %v513_v50 = vpop.f32.mrf.mxu1 }
 0x35a   : > { %v519_v51 = vmul.f32 0.35355338, %v513_v50 }
 0x35b   : > { %v940_v52 = vpop.f32.mrf.mxu1 }
 0x35c   : > { %v520_v53 = vsel %vm265_vm2, %v519_v51, -inf }
 0x35d   : > { %521 = vmax.xlane.f32.xlu0 %v520_v53  ;;  %v516_v54 = vpop.f32.mrf.mxu1 }
 0x35f   : > { %v941_v55 = vpop.f32.mrf.mxu1 }
 0x361   : > { %v640_v56 = vpop.f32.mrf.mxu1 }
 0x362   : > { %v646_v57 = vmul.f32 0.35355338, %v640_v56 }
 0x363   : > { %v952_v58 = vpop.f32.mrf.mxu1 }
 0x364   : > { %v647_v59 = vsel %vm265_vm2, %v646_v57, -inf  ;;  %v787_v58 = vld [vmem:[%s205_s16] sm:$0x7] }
 0x365   : > { %648 = vmax.xlane.f32.xlu1 %v647_v59  ;;  %v643_v60 = vpop.f32.mrf.mxu1  ;;  %v884_v59 = vld [vmem:[%s1181_s2] ss:$0 sm:$0xff] }
 0x366   : > { %v788_v60 = vunpack.c.l.bf16 %v787_v58 }
 0x367   : > { %v953_v61 = vpop.f32.mrf.mxu1 }
 0x3de   : > { %v395_v62 = vpop.xlane.xlu1 %394 }
 0x3df   : > { %v396_v63 = vsub.f32 %v392_v45, %v395_v62 }
 0x3e1   : > { %v397_v1 = vmul.f32 1.442695, %v396_v63 }
 0x3e3   : > { %1003 = vpow2.f32 %v397_v1 }
 0x3e6   : > { %v522_v10 = vpop.xlane.xlu0 %521 }
 0x3e7   : > { %v523_v11 = vsub.f32 %v519_v51, %v522_v10 }
 0x3e9   : > { %v524_v13 = vmul.f32 1.442695, %v523_v11 }
 0x3ee   : > { %v649_v2 = vpop.xlane.xlu1 %648 }
 0x3ef   : > { %v650_v3 = vsub.f32 %v646_v57, %v649_v2  ;;  %v793_v2 = vld [vmem:[%s209_s22] sm:$0x7] }
 0x3f0   : > { %v1004_v4 = vpop.eup %1003 }
 0x3f1   : > { %v651_v6 = vmul.f32 1.442695, %v650_v3  ;;  %v399_v7 = vsel %vm265_vm2, %v1004_v4, 0.0 }
 0x3f2   : > { %400 = vadd.xlane.f32.xlu1 %v399_v7 }
 0x3f3   : > { %1005 = vpow2.f32 %v651_v6 }
 0x3f4   : > { %1007 = vpow2.f32 %v524_v13 }
 0x400   : > { %v1006_v8 = vpop.eup %1005 }
 0x401   : > { %v653_v9 = vsel %vm265_vm2, %v1006_v8, 0.0  ;;  %v1008_v14 = vpop.eup %1007 }
 0x402   : > { %654 = vadd.xlane.f32.xlu0 %v653_v9  ;;  %v526_v15 = vsel %vm265_vm2, %v1008_v14, 0.0 }
 0x403   : > { %405 = vrot.lane.b32.xlu1 %v1094_v5, %s1034_s29 }
 0x418   : > { %532 = vrot.lane.b32.xlu0 %v1109_v23, %s1035_s30 }
 0x427   : > { %527 = vadd.xlane.f32.xlu1 %v526_v15 }
 0x438   : > { %659 = vrot.lane.b32.xlu1 %v1099_v12, %s1036_s5 }
 0x47b   : > { %v401_v17 = vpop.xlane.xlu1 %400 }
 0x47c   : > { %1009 = vrcp.f32 %v401_v17 }
 0x47f   : > { %v406_v18 = vpop.permute.xlu1 %405 }
 0x480   : > { %v411_v19 = vand.u32 %v406_v18, %v1102_v16 }
 0x482   : > { %931 = vmatpush3.bf16.msra.mxu0 %v411_v19 }
 0x483   : > { %942 = vmatprep.subr.bf16.mxu0 %v1023_v0 }
 0x489   : > { %v1010_v5 = vpop.eup %1009 }
 0x48a   : > { %v403_v20 = vmul.f32 %v1010_v5, %v1004_v4 }
 0x48b   : > { %v655_v21 = vpop.xlane.xlu0 %654 }
 0x48c   : > { %v404_v22 = vpack.c.bf16 %v403_v20, %v403_v20 }
 0x48e   : > { %933 = vmatmul.mubr.msk.bf16.vlgmr.msra.gmra.mxu0 %vm280_vm5, %v404_v22 }
 0x48f   : > { %v533_v23 = vpop.permute.xlu0 %532  ;;  %944 = vmatprep.mubr.msk.bf16.mxu0 %vm1024_vm0, %v1023_v0 }
 0x490   : > { %v538_v12 = vand.u32 %v533_v23, %v1102_v16 }
 0x492   : > { %943 = vmatpush3.bf16.msra.mxu0 %v538_v12 }
 0x493   : > { %954 = vmatprep.subr.bf16.mxu0 %v1023_v0 }
 0x4b0   : > { %v528_v24 = vpop.xlane.xlu1 %527 }
 0x4b1   : > { %1011 = vrcp.f32 %v528_v24 }
 0x4b2   : > { %1013 = vrcp.f32 %v655_v21 }
 0x4b4   : > { %v660_v25 = vpop.permute.xlu1 %659 }
 0x4b5   : > { %v665_v28 = vand.u32 %v660_v25, %v1102_v16 }
 0x4be   : > { %v1012_v26 = vpop.eup %1011 }
 0x4bf   : > { %v530_v27 = vmul.f32 %v1012_v26, %v1008_v14  ;;  %v1014_v30 = vpop.eup %1013 }
 0x4c0   : > { %v657_v31 = vmul.f32 %v1014_v30, %v1006_v8 }
 0x4c1   : > { %v531_v29 = vpack.c.bf16 %v530_v27, %v530_v27 }
 0x4c2   : > { %v658_v32 = vpack.c.bf16 %v657_v31, %v657_v31 }
 0x4c3   : > { %945 = vmatmul.mubr.msk.bf16.vlgmr.msra.gmra.mxu0 %vm280_vm5, %v531_v29 }
 0x4c4   : > { %955 = vmatpush3.bf16.msra.mxu0 %v665_v28  ;;  %956 = vmatprep.mubr.msk.bf16.mxu0 %vm1024_vm0, %v1023_v0  ;;  %vm791_vm0 = vcmask 256000  }
 0x4c5   : > { %vm792_vm1 = vmand %vm791_vm0, %vm333_vm7 }
 0x4cb   : > { %957 = vmatmul.mubr.msk.bf16.vlgmr.msra.gmra.mxu0 %vm280_vm5, %v658_v32 }
 0x54e   : > { %v447_v33 = vpop.f32.mrf.mxu0 }
 0x54f   : > { %v890_v34 = vpack.c.bf16 %v447_v33, %v447_v33 }
 0x550   : > { %v934_v35 = vpop.f32.mrf.mxu0 }
 0x551   : > { %457 = vrot.lane.b32.xlu1 %v890_v34, %s1037_s6 }
 0x552   : > { %v450_v36 = vpop.f32.mrf.mxu0 }
 0x554   : > { %v935_v37 = vpop.f32.mrf.mxu0 }
 0x583   : > { %v574_v16 = vpop.f32.mrf.mxu0 }
 0x584   : > { %v891_v39 = vpack.c.bf16 %v574_v16, %v574_v16 }
 0x585   : > { %v946_v40 = vpop.f32.mrf.mxu0 }
 0x586   : > { %584 = vrot.lane.b32.xlu0 %v891_v39, %s1038_s11 }
 0x587   : > { %v577_v42 = vpop.f32.mrf.mxu0 }
 0x589   : > { %v947_v43 = vpop.f32.mrf.mxu0 }
 0x58b   : > { %v701_v44 = vpop.f32.mrf.mxu0 }
 0x58c   : > { %v892_v45 = vpack.c.bf16 %v701_v44, %v701_v44 }
 0x58d   : > { %v958_v46 = vpop.f32.mrf.mxu0 }
 0x58e   : > { %711 = vrot.lane.b32.xlu1 %v892_v45, %s1039_s12 }
 0x58f   : > { %v704_v47 = vpop.f32.mrf.mxu0 }
 0x591   : > { %v959_v48 = vpop.f32.mrf.mxu0 }
 0x5c3   : > { %v458_v50 = vpop.permute.xlu1 %457 }
 0x5c4   : > { %v463_v51 = vsel %vm461_vm10, %v458_v50, %v462_v49 }
 0x5c5   : > { %464 = vst [vmem:[#allocation2] sm:$0x7] %v463_v51 }
 0x5cc   : > { %v589_v0 = vld [vmem:[#allocation2] sm:$0x7] }
 0x5f8   : > { %v585_v52 = vpop.permute.xlu0 %584 }
 0x5f9   : > { %v590_v53 = vsel %vm588_vm12, %v585_v52, %v589_v0 }
 0x5fa   : > { %591 = vst [vmem:[#allocation2] sm:$0x7] %v590_v53 }
 0x600   : > { %v712_v54 = vpop.permute.xlu1 %711 }
 0x601   : > { %v716_v55 = vld [vmem:[#allocation2] sm:$0x7] }
 0x602   : > { %v717_v56 = vsel %vm715_vm14, %v712_v54, %v716_v55 }
 0x603   : > { %718 = vst [vmem:[#allocation2] sm:$0x7] %v717_v56 }
 0x60a   : > { %v719_v57 = vld [vmem:[#allocation2] sm:$0x7] }
 0x60b   : > { %965 = vmatmul.mubr.msk.bf16.vlgmr.msra.gmra.mxu1 %vm743_vm15, %v719_v57 }
 0x6cb   : > { %v781_v61 = vpop.f32.mrf.mxu1 }
 0x6cc   : > { %v782_v62 = vadd.f32 %v884_v59, %v781_v61 }
 0x6cd   : > { %v966_v63 = vpop.f32.mrf.mxu1 }
 0x6ce   : > { %v789_v1 = vadd.f32 %v788_v60, %v782_v62 }
 0x6cf   : > { %v784_v3 = vpop.f32.mrf.mxu1 }
 0x6d0   : > { %v790_v4 = vpack.c.bf16 %v789_v1, %v789_v1 }
 0x6d1   : > { %v967_v6 = vpop.f32.mrf.mxu1 }
 0x6d2   : > { %v794_v7 = vsel %vm792_vm1, %v790_v4, %v793_v2 }
 0x6d3   : > { %795 = vst [vmem:[%s209_s22] sm:$0x7] %v794_v7 }
 0x6d4 PF: > { %s14_s15 = sadd.s32 1, %s1021_s15  }
 0x6d5   : > { %p11_p4 = scmp.ge.s32.totalorder %s14_s15, 4  }
 0x6d7   :  { %13 = sbr.rel (!%p11_p4) target bundleno = 1 (0x1), region = 69 }

// kernel: _lambda_.23
= control target key start
LH: loop header
LB: loop body
LE: loop exit
PB: predicated region body
PF: predicated region fallthrough
CT: control target
= control target key end

     0   :  { %vm29_vm0 = vcmask 261120   ;;  %v241_v16 = vmov 0.0   ;;  %vm242_vm1 = vmmov 0   ;;  %vm83_vm2 = vcmask 257024   ;;  %s299_s0 = inlined_call_operand.vmem [shape: bf16[16,32], index: 0, kind: input, shape index: {}]   ;;  %s300_s1 = inlined_call_operand.vmem [shape: bf16[32,128], index: 1, kind: input, shape index: {}]   ;;  %s301_s3 = inlined_call_operand.vmem [shape: f32[1,32], index: 3, kind: input, shape index: {}]   ;;  %s302_s4 = inlined_call_operand.vmem [shape: f32[1,32], index: 4, kind: input, shape index: {}]   ;;  %s303_s2 = inlined_call_operand.vmem [shape: f32[1,128], index: 2, kind: input, shape index: {}]   ;;  %s304_s5 = inlined_call_operand.vmem [shape: bf16[16,128], index: 5, kind: output, shape index: {}]  }
   0x1   :  { %v209_v0 = vld [vmem:[%s299_s0] sm:$0xff]   ;;  %v230_v15 = vld [vmem:[%s300_s1 + $0x8] sm:$0xff]   ;;  %220 = vmatprep.subr.bf16.mxu0 %v241_v16  ;;  %224 = vmatprep.mubr.msk.bf16.mxu0 %vm242_vm1, %v241_v16 }
   0x2   :  { %v210_v1 = vunpack.c.l.bf16 %v209_v0  ;;  %v211_v2 = vunpack.c.h.bf16 %v209_v0  ;;  %221 = vmatpush3.bf16.msra.mxu0 %v230_v15  ;;  %v231_v17 = vld [vmem:[%s300_s1] sm:$0xff]  }
   0x3   :  { %222 = vmatprep.subr.bf16.mxu0 %v241_v16  ;;  %v193_v25 = vld [vmem:[%s301_s3] ss:$0 sm:$0xff] }
   0x4   :  { %v30_v3 = vsel %vm29_vm0, %v210_v1, 0.0  ;;  %v33_v4 = vsel %vm29_vm0, %v211_v2, 0.0  ;;  %v194_v27 = vld [vmem:[%s302_s4] ss:$0 sm:$0xff] }
   0x5   :  { %31 = vadd.xlane.f32.xlu0 %v30_v3  ;;  %v197_v37 = vld [vmem:[%s303_s2] ss:$0 sm:$0xff] }
   0x6   :  { %223 = vmatpush3.bf16.msra.mxu0 %v231_v17 }
   0x9   :  { %34 = vadd.xlane.f32.xlu0 %v33_v4 }
  0x8e   :  { %v32_v5 = vpop.xlane.xlu0 %31 }
  0x8f   :  { %v37_v6 = vmul.f32 0.03125, %v32_v5 }
  0x91   :  { %v39_v7 = vsub.f32 %v210_v1, %v37_v6 }
  0x92   :  { %v35_v8 = vpop.xlane.xlu0 %34 }
  0x93   :  { %v38_v9 = vmul.f32 0.03125, %v35_v8  ;;  %v41_v10 = vmul.f32 %v39_v7, %v39_v7 }
  0x95   :  { %v40_v11 = vsub.f32 %v211_v2, %v38_v9  ;;  %v43_v12 = vsel %vm29_vm0, %v41_v10, 0.0 }
  0x96   :  { %44 = vadd.xlane.f32.xlu1 %v43_v12 }
  0x97   :  { %v42_v13 = vmul.f32 %v40_v11, %v40_v11 }
  0x99   :  { %v46_v14 = vsel %vm29_vm0, %v42_v13, 0.0 }
  0x9a   :  { %47 = vadd.xlane.f32.xlu1 %v46_v14 }
 0x11f   :  { %v45_v18 = vpop.xlane.xlu1 %44 }
 0x120   :  { %v49_v19 = vmul.f32 0.03125, %v45_v18 }
 0x122   :  { %v51_v20 = vadd.f32 1e-05, %v49_v19 }
 0x123   :  { %v48_v21 = vpop.xlane.xlu1 %47 }
 0x124   :  { %233 = vrsqrt.f32 %v51_v20  ;;  %v50_v22 = vmul.f32 0.03125, %v48_v21 }
 0x126   :  { %v52_v23 = vadd.f32 1e-05, %v50_v22 }
 0x128   :  { %235 = vrsqrt.f32 %v52_v23 }
 0x131   :  { %v234_v24 = vpop.eup %233 }
 0x132   :  { %v55_v26 = vmul.f32 %v234_v24, %v39_v7 }
 0x134   :  { %v64_v28 = vmul.f32 %v193_v25, %v55_v26 }
 0x135   :  { %v236_v29 = vpop.eup %235 }
 0x136   :  { %v73_v30 = vadd.f32 %v194_v27, %v64_v28  ;;  %v56_v31 = vmul.f32 %v236_v29, %v40_v11 }
 0x138   :  { %v204_v32 = vpack.c.bf16 %v73_v30, %v73_v30  ;;  %v65_v33 = vmul.f32 %v193_v25, %v56_v31 }
 0x13a   :  { %84 = vst.msk [vmem:[#allocation2] sm:$0xf] %vm83_vm2, %v204_v32  ;;  %v74_v34 = vadd.f32 %v194_v27, %v65_v33 }
 0x13c   :  { %v205_v35 = vpack.c.bf16 %v74_v34, %v74_v34 }
 0x13e   :  { %85 = vst.msk [vmem:[#allocation2 + $0x4] sm:$0xf] %vm83_vm2, %v205_v35 }
 0x145   :  { %v232_v36 = vld [vmem:[#allocation2] sm:$0xff]  }
 0x146   :  { %225 = vmatmul.mubr.msk.bf16.vlgmr.msra.gmra.mxu0 %vm29_vm0, %v232_v36 }
 0x206   :  { %v154_v38 = vpop.f32.mrf.mxu0 }
 0x207   :  { %v155_v39 = vadd.f32 %v197_v37, %v154_v38 }
 0x208   :  { %v226_v40 = vpop.f32.mrf.mxu0 }
 0x209   :  { %v161_v41 = vmul.f32 %v155_v39, %v155_v39 }
 0x20a   :  { %v157_v42 = vpop.f32.mrf.mxu0 }
 0x20b   :  { %v163_v43 = vmul.f32 %v161_v41, %v155_v39  ;;  %v158_v44 = vadd.f32 %v197_v37, %v157_v42 }
 0x20c   :  { %v227_v45 = vpop.f32.mrf.mxu0 }
 0x20d   :  { %v165_v46 = vmul.f32 0.044715, %v163_v43  ;;  %v162_v47 = vmul.f32 %v158_v44, %v158_v44 }
 0x20f   :  { %v167_v48 = vadd.f32 %v165_v46, %v155_v39  ;;  %v164_v49 = vmul.f32 %v162_v47, %v158_v44 }
 0x211   :  { %v169_v50 = vmul.f32 0.7978846, %v167_v48  ;;  %v166_v51 = vmul.f32 0.044715, %v164_v49 }
 0x213   :  { %237 = vtanh.f32 %v169_v50  ;;  %v168_v52 = vadd.f32 %v166_v51, %v158_v44 }
 0x215   :  { %v170_v53 = vmul.f32 0.7978846, %v168_v52 }
 0x217   :  { %239 = vtanh.f32 %v170_v53 }
 0x220   :  { %v238_v54 = vpop.eup %237 }
 0x221   :  { %v173_v55 = vadd.f32 1.0, %v238_v54 }
 0x223   :  { %v175_v57 = vmul.f32 0.5, %v173_v55 }
 0x224   :  { %v240_v56 = vpop.eup %239 }
 0x225   :  { %v174_v58 = vadd.f32 1.0, %v240_v56  ;;  %v177_v60 = vmul.f32 %v175_v57, %v155_v39 }
 0x227   :  { %v176_v59 = vmul.f32 0.5, %v174_v58 }
 0x229   :  { %v178_v61 = vmul.f32 %v176_v59, %v158_v44 }
 0x22b   :  { %v215_v62 = vpack.c.bf16 %v178_v61, %v177_v60 }
 0x22d   :  { %216 = vst [vmem:[%s304_s5] sm:$0xff] %v215_v62  }

// kernel: _lambda_.24
= control target key start
LH: loop header
LB: loop body
LE: loop exit
PB: predicated region body
PF: predicated region fallthrough
CT: control target
= control target key end

     0   :  { %v217_v0 = vmov 0.0   ;;  %vm218_vm0 = vmmov 0   ;;  %vm152_vm1 = vcmask 257024   ;;  %s283_s1 = inlined_call_operand.vmem [shape: bf16[128,32], index: 1, kind: input, shape index: {}]   ;;  %s284_s0 = inlined_call_operand.vmem [shape: bf16[16,128], index: 0, kind: input, shape index: {}]   ;;  %s285_s3 = inlined_call_operand.vmem [shape: bf16[16,32], index: 3, kind: input, shape index: {}]   ;;  %s286_s2 = inlined_call_operand.vmem [shape: f32[1,32], index: 2, kind: input, shape index: {}]   ;;  %s287_s4 = inlined_call_operand.vmem [shape: bf16[16,32], index: 4, kind: output, shape index: {}]  }
   0x1   :  { %186 = vmatprep.subr.bf16.mxu0 %v217_v0  ;;  %v208_v1 = vld [vmem:[%s283_s1 + $0x38] sm:$0xff]   ;;  %202 = vmatprep.mubr.msk.bf16.mxu0 %vm218_vm0, %v217_v0  ;;  %v209_v2 = vld [vmem:[%s283_s1 + $0x30] sm:$0xff]   ;;  %v210_v3 = vld [vmem:[%s283_s1 + $0x28] sm:$0xff]  }
   0x2   :  { %187 = vmatpush3.bf16.msra.mxu0 %v208_v1  ;;  %v211_v4 = vld [vmem:[%s283_s1 + $0x20] sm:$0xff]   ;;  %v212_v5 = vld [vmem:[%s283_s1 + $0x18] sm:$0xff]   ;;  %v213_v6 = vld [vmem:[%s283_s1 + $0x10] sm:$0xff]  }
   0x3   :  { %188 = vmatprep.subr.bf16.mxu0 %v217_v0  ;;  %v214_v7 = vld [vmem:[%s283_s1 + $0x8] sm:$0xff]   ;;  %v215_v8 = vld [vmem:[%s283_s1] sm:$0xff]  }
   0x4   :  { %v216_v9 = vld [vmem:[%s284_s0] sm:$0xff]  }
   0x5   :  { %v174_v10 = vld [vmem:[%s285_s3] sm:$0xff]  }
   0x6   :  { %189 = vmatpush3.bf16.msra.mxu0 %v209_v2  ;;  %v159_v11 = vld [vmem:[%s286_s2] ss:$0 sm:$0xff]  ;;  %v175_v12 = vunpack.c.l.bf16 %v174_v10  ;;  %v176_v17 = vunpack.c.h.bf16 %v174_v10 }
   0x7   :  { %190 = vmatprep.subr.bf16.mxu0 %v217_v0 }
   0xa   :  { %191 = vmatpush3.bf16.msra.mxu0 %v210_v3 }
   0xb   :  { %192 = vmatprep.subr.bf16.mxu0 %v217_v0 }
   0xe   :  { %193 = vmatpush3.bf16.msra.mxu0 %v211_v4 }
   0xf   :  { %194 = vmatprep.subr.bf16.mxu0 %v217_v0 }
  0x12   :  { %195 = vmatpush3.bf16.msra.mxu0 %v212_v5 }
  0x13   :  { %196 = vmatprep.subr.bf16.mxu0 %v217_v0 }
  0x16   :  { %197 = vmatpush3.bf16.msra.mxu0 %v213_v6 }
  0x17   :  { %198 = vmatprep.subr.bf16.mxu0 %v217_v0 }
  0x1a   :  { %199 = vmatpush3.bf16.msra.mxu0 %v214_v7 }
  0x1b   :  { %200 = vmatprep.subr.bf16.mxu0 %v217_v0 }
  0x1e   :  { %201 = vmatpush3.bf16.msra.mxu0 %v215_v8 }
  0x21   :  { %203 = vmatmul.mubr.bf16.vlgmr.msra.gmra.mxu0 %v216_v9 }
  0xe1   :  { %v131_v13 = vpop.f32.mrf.mxu0 }
  0xe2   :  { %v132_v14 = vadd.f32 %v159_v11, %v131_v13 }
  0xe3   :  { %v204_v15 = vpop.f32.mrf.mxu0 }
  0xe4   :  { %v142_v16 = vadd.f32 %v175_v12, %v132_v14 }
  0xe5   :  { %v134_v18 = vpop.f32.mrf.mxu0 }
  0xe6   :  { %v171_v19 = vpack.c.bf16 %v142_v16, %v142_v16  ;;  %v135_v20 = vadd.f32 %v159_v11, %v134_v18 }
  0xe7   :  { %v205_v21 = vpop.f32.mrf.mxu0 }
  0xe8   :  { %153 = vst.msk [vmem:[%s287_s4] sm:$0xf] %vm152_vm1, %v171_v19  ;;  %v143_v22 = vadd.f32 %v176_v17, %v135_v20 }
  0xea   :  { %v172_v23 = vpack.c.bf16 %v143_v22, %v143_v22 }
  0xec   :  { %154 = vst.msk [vmem:[%s287_s4 + $0x4] sm:$0xf] %vm152_vm1, %v172_v23 }

// kernel: _lambda_.31
= control target key start
LH: loop header
LB: loop body
LE: loop exit
PB: predicated region body
PF: predicated region fallthrough
CT: control target
= control target key end

     0   :  { %s1051_s15 = smov 0   ;;  %s1176_s0 = inlined_call_operand.vmem [shape: bf16[2,8,96], index: 0, kind: input, shape index: {}]   ;;  %s1177_s1 = inlined_call_operand.vmem [shape: bf16[32,32], index: 1, kind: input, shape index: {}]   ;;  %s1178_s2 = inlined_call_operand.vmem [shape: f32[1,32], index: 2, kind: input, shape index: {}]   ;;  %s1179_s3 = inlined_call_operand.vmem [shape: bf16[2,8,32], index: 3, kind: input, shape index: {}]   ;;  %s1180_s4 = inlined_call_operand.vmem [shape: bf16[2,8,32], index: 4, kind: output, shape index: {}]  }
   0x1 LB: > { %s849_s16 = sadd.s32 4294967295, %s1008_s15   ;;  %p853_p0 = scmp.ge.s32.totalorder %s1008_s15, 1  ;;  %s1008_s15 = sphi %s1051_s15, %s14_s15  }
   0x2   : > { %p170_p1 = scmp.lt.s32.totalorder %s1008_s15, 3 }
   0x4   : > { %p171_p2 = pnand %p853_p0, %p170_p1 }
   0x5   : > { %p198_p3 = scmp.lt.s32.totalorder (!%p171_p2), %s849_s16, 1  ;;  %s1012_s21 = smov (!%p171_p2), 96  }
   0x6   : > { %174 = sbr.rel (%p171_p2) target bundleno = 1747 (0x6d3), region = 36  ;;  %s1013_s22 = smov (!%p171_p2), 64  }
   0x7   : > { %s1014_s23 = smov (!%p171_p2), 88   ;;  %s1015_s24 = smov (!%p171_p2), 72  }
   0x8   : > { %s1016_s25 = smov (!%p171_p2), 120   ;;  %s1017_s26 = smov (!%p171_p2), 80  }
   0x9   : > { %s1018_s27 = smov (!%p171_p2), 112   ;;  %s1019_s28 = smov (!%p171_p2), 104  }
   0xa   : > { %s1020_s29 = smov (!%p171_p2), 56   ;;  %s1021_s30 = smov (!%p171_p2), 48  }
   0xb   : > { %v1010_v0 = vmov 0.0   ;;  %vm1011_vm0 = vmmov 0   ;;  %s1182_s16 = smov (!%p198_p3, %s849_s16), 1  ;;  %vm222_vm1 = vcmask 64512   ;;  %v211_v6 = vlaneseq  ;;  %s1022_s5 = smov 40  }
   0xc   : > { %900 = vmatprep.subr.bf16.mxu0 %v1010_v0  ;;  %902 = vmatprep.mubr.msk.bf16.mxu0 %vm1011_vm0, %v1010_v0  ;;  %s1065_s17 = sshll.u32 %s1182_s16, 2  ;;  %vm288_vm3 = vcmask 1043456   ;;  %vm333_vm4 = vcmask 60416   ;;  %s1023_s6 = smov 8   ;;  %vm458_vm5 = vcmask 126016   ;;  %vm583_vm6 = vcmask 191616  }
   0xd   : > { %906 = vmatprep.subr.bf16.mxu1 %v1010_v0  ;;  %908 = vmatprep.mubr.msk.bf16.mxu1 %vm1011_vm0, %v1010_v0  ;;  %s1071_s20 = scalar_lea.vmem %s1176_s0, %s1065_s17  ;;  %v1083_v7 = vshrl.u32 %v211_v6, 7  ;;  %v1085_v8 = vand.u32 127, %v211_v6  ;;  %s1024_s11 = smov 16   ;;  %vm708_vm7 = vcmask 257216   ;;  %vm734_vm8 = vcmask 261120  }
   0xe   : > { %v216_v1 = vld [vmem:[%s1071_s20] sm:$0xf]  ;;  %s1025_s12 = smov 24   ;;  %s205_s16 = scalar_lea.vmem %s1179_s3, %s1065_s17  ;;  %vm782_vm9 = vcmask 257024  }
   0xf   : > { %v857_v2 = vcombine.low %v216_v1, %v216_v1  ;;  %v1080_v5 = vld [vmem:[%s1071_s20] ss:$0 sps:$4 sm:$0xff]   ;;  %vm215_vm2 = vcmp.gt.s32.totalorder %v1085_v8, %v1083_v7 }
  0x10   : > { %v1094_v16 = vld [vmem:[%s1071_s20] ss:$0 sps:$4 sm:$0xff]  }
  0x11   : > { %220 = vrot.lane.b32.xlu0 %v857_v2, %s1012_s21  ;;  %283 = vrot.lane.b32.xlu1 %v857_v2, %s1013_s22  ;;  %v1102_v24 = vld [vmem:[%s1071_s20] ss:$0 sps:$4 sm:$0xff]   ;;  %s209_s22 = scalar_lea.vmem %s1180_s4, %s1065_s17 }
  0x15   : > { %341 = vrot.lane.b32.xlu1 %v1080_v5, %s1014_s23 }
  0x83   : > { %v221_v3 = vpop.permute.xlu0 %220  ;;  %v284_v17 = vpop.permute.xlu1 %283 }
  0x84   : > { %v227_v4 = vsel %vm222_vm1, %v221_v3, 0  ;;  %v290_v18 = vsel %vm288_vm3, %v284_v17, 0 }
  0x85   : > { %901 = vmatpush3.bf16.xpose.msra.mxu0 %v227_v4  ;;  %907 = vmatpush3.bf16.msra.mxu1 %v290_v18 }
  0x86   : > { %918 = vmatprep.subr.bf16.mxu0 %v1010_v0  ;;  %912 = vmatprep.subr.bf16.mxu1 %v1010_v0 }
  0x87   : > { %v342_v25 = vpop.permute.xlu1 %341 }
  0x88   : > { %v347_v31 = vsel %vm222_vm1, %v342_v25, 0 }
  0x8c   : > { %903 = vmatmul.mubr.msk.bf16.vlgmr.msra.gmra.mxu0 %vm222_vm1, %v216_v1 }
  0x8d   : > { %920 = vmatprep.mubr.msk.bf16.mxu0 %vm1011_vm0, %v1010_v0 }
 0x14c   : > { %v263_v9 = vpop.f32.mrf.mxu0 }
 0x14d   : > { %v269_v10 = vmul.f32 0.35355338, %v263_v9 }
 0x14e   : > { %v904_v11 = vpop.f32.mrf.mxu0 }
 0x14f   : > { %v270_v12 = vsel %vm215_vm2, -1e+09, %v269_v10 }
 0x150   : > { %v266_v13 = vpop.f32.mrf.mxu0  ;;  %v271_v14 = vsel %vm222_vm1, %v270_v12, -inf }
 0x151   : > { %272 = vmax.xlane.f32.xlu0 %v271_v14 }
 0x152   : > { %v905_v15 = vpop.f32.mrf.mxu0 }
 0x167   : > { %591 = vrot.lane.b32.xlu0 %v1094_v16, %s1015_s24 }
 0x1da   : > { %v273_v19 = vpop.xlane.xlu0 %272 }
 0x1db   : > { %v274_v20 = vsub.f32 %v270_v12, %v273_v19 }
 0x1dd   : > { %v275_v21 = vmul.f32 1.442695, %v274_v20 }
 0x1de   : > { %v592_v34 = vpop.permute.xlu0 %591 }
 0x1df   : > { %986 = vpow2.f32 %v275_v21  ;;  %v597_v36 = vsel %vm222_vm1, %v592_v34, 0 }
 0x1ec   : > { %v987_v22 = vpop.eup %986 }
 0x1ed   : > { %v277_v23 = vsel %vm222_vm1, %v987_v22, 0.0 }
 0x1ee   : > { %278 = vadd.xlane.f32.xlu1 %v277_v23 }
 0x1ff   : > { %339 = vrot.lane.b32.xlu1 %v1080_v5, %s1016_s25 }
 0x203   : > { %466 = vrot.lane.b32.xlu1 %v1102_v24, %s1017_s26 }
 0x207   : > { %464 = vrot.lane.b32.xlu1 %v1102_v24, %s1018_s27 }
 0x20b   : > { %589 = vrot.lane.b32.xlu1 %v1094_v16, %s1019_s28 }
 0x277   : > { %v279_v26 = vpop.xlane.xlu1 %278 }
 0x278   : > { %988 = vrcp.f32 %v279_v26 }
 0x27b   : > { %v340_v29 = vpop.permute.xlu1 %339 }
 0x27f   : > { %v467_v32 = vpop.permute.xlu1 %466 }
 0x280   : > { %v472_v33 = vsel %vm222_vm1, %v467_v32, 0 }
 0x283   : > { %v465_v35 = vpop.permute.xlu1 %464 }
 0x285   : > { %v989_v27 = vpop.eup %988 }
 0x286   : > { %v281_v28 = vmul.f32 %v989_v27, %v987_v22 }
 0x287   : > { %v590_v37 = vpop.permute.xlu1 %589 }
 0x288   : > { %v282_v30 = vpack.c.bf16 %v281_v28, %v281_v28 }
 0x28a   : > { %909 = vmatmul.mubr.msk.bf16.vlgmr.msra.gmra.mxu1 %vm222_vm1, %v282_v30 }
 0x28b   : > { %913 = vmatpush3.bf16.xpose.msra.mxu1 %v347_v31  ;;  %914 = vmatprep.mubr.msk.bf16.mxu1 %vm1011_vm0, %v1010_v0 }
 0x28c   : > { %924 = vmatprep.subr.bf16.mxu1 %v1010_v0 }
 0x292   : > { %915 = vmatmul.mubr.msk.bf16.vlgmr.msra.gmra.mxu1 %vm222_vm1, %v340_v29 }
 0x293   : > { %925 = vmatpush3.bf16.xpose.msra.mxu1 %v472_v33  ;;  %926 = vmatprep.mubr.msk.bf16.mxu1 %vm1011_vm0, %v1010_v0 }
 0x294   : > { %936 = vmatprep.subr.bf16.mxu1 %v1010_v0 }
 0x29a   : > { %927 = vmatmul.mubr.msk.bf16.vlgmr.msra.gmra.mxu1 %vm222_vm1, %v465_v35 }
 0x29b   : > { %937 = vmatpush3.bf16.xpose.msra.mxu1 %v597_v36  ;;  %938 = vmatprep.mubr.msk.bf16.mxu1 %vm1011_vm0, %v1010_v0 }
 0x29c   : > { %948 = vmatprep.subr.bf16.mxu1 %v1010_v0 }
 0x2a2   : > { %939 = vmatmul.mubr.msk.bf16.vlgmr.msra.gmra.mxu1 %vm222_vm1, %v590_v37 }
 0x2a3   : > { %952 = vmatprep.mubr.msk.bf16.mxu1 %vm1011_vm0, %v1010_v0 }
 0x34a   : > { %v326_v38 = vpop.f32.mrf.mxu1 }
 0x34b   : > { %v332_v39 = vpack.c.bf16 %v326_v38, %v326_v38 }
 0x34c   : > { %v910_v40 = vpop.f32.mrf.mxu1 }
 0x34d   : > { %334 = vst.msk [vmem:[#allocation2] sm:$0xf] %vm333_vm4, %v332_v39  ;;  %v984_v39 = vld [vmem:[%s1177_s1 + $0x8] sm:$0xff]  }
 0x34e   : > { %v329_v41 = vpop.f32.mrf.mxu1  ;;  %949 = vmatpush3.bf16.msra.mxu1 %v984_v39 }
 0x34f   : > { %v985_v41 = vld [vmem:[%s1177_s1] sm:$0xff]   ;;  %950 = vmatprep.subr.bf16.mxu1 %v1010_v0 }
 0x350   : > { %v911_v42 = vpop.f32.mrf.mxu1 }
 0x352   : > { %v383_v43 = vpop.f32.mrf.mxu1  ;;  %951 = vmatpush3.bf16.msra.mxu1 %v985_v41 }
 0x353   : > { %v389_v44 = vmul.f32 0.35355338, %v383_v43 }
 0x354   : > { %v916_v45 = vpop.f32.mrf.mxu1 }
 0x355   : > { %v390_v46 = vsel %vm215_vm2, -1e+09, %v389_v44 }
 0x356   : > { %v386_v47 = vpop.f32.mrf.mxu1  ;;  %v391_v48 = vsel %vm222_vm1, %v390_v46, -inf }
 0x357   : > { %392 = vmax.xlane.f32.xlu1 %v391_v48 }
 0x358   : > { %v917_v49 = vpop.f32.mrf.mxu1 }
 0x35a   : > { %v508_v50 = vpop.f32.mrf.mxu1 }
 0x35b   : > { %v514_v51 = vmul.f32 0.35355338, %v508_v50 }
 0x35c   : > { %v928_v52 = vpop.f32.mrf.mxu1 }
 0x35d   : > { %v515_v53 = vsel %vm215_vm2, -1e+09, %v514_v51 }
 0x35e   : > { %v511_v54 = vpop.f32.mrf.mxu1  ;;  %v516_v55 = vsel %vm222_vm1, %v515_v53, -inf }
 0x35f   : > { %517 = vmax.xlane.f32.xlu0 %v516_v55  ;;  %v778_v54 = vld [vmem:[%s205_s16] sm:$0xf] }
 0x360   : > { %v929_v56 = vpop.f32.mrf.mxu1  ;;  %v872_v55 = vld [vmem:[%s1178_s2] ss:$0 sm:$0xff] }
 0x361   : > { %v779_v56 = vunpack.c.l.bf16 %v778_v54 }
 0x362   : > { %v633_v57 = vpop.f32.mrf.mxu1 }
 0x363   : > { %v639_v58 = vmul.f32 0.35355338, %v633_v57 }
 0x364   : > { %v940_v59 = vpop.f32.mrf.mxu1 }
 0x365   : > { %v640_v60 = vsel %vm215_vm2, -1e+09, %v639_v58 }
 0x366   : > { %v641_v61 = vsel %vm222_vm1, %v640_v60, -inf  ;;  %v636_v62 = vpop.f32.mrf.mxu1 }
 0x367   : > { %642 = vmax.xlane.f32.xlu1 %v641_v61 }
 0x368   : > { %v941_v63 = vpop.f32.mrf.mxu1 }
 0x3e0   : > { %v393_v1 = vpop.xlane.xlu1 %392 }
 0x3e1   : > { %v394_v2 = vsub.f32 %v390_v46, %v393_v1 }
 0x3e3   : > { %v395_v3 = vmul.f32 1.442695, %v394_v2 }
 0x3e5   : > { %990 = vpow2.f32 %v395_v3 }
 0x3e8   : > { %v518_v8 = vpop.xlane.xlu0 %517 }
 0x3e9   : > { %v519_v13 = vsub.f32 %v515_v53, %v518_v8 }
 0x3eb   : > { %v520_v14 = vmul.f32 1.442695, %v519_v13 }
 0x3f0   : > { %v643_v4 = vpop.xlane.xlu1 %642 }
 0x3f1   : > { %v644_v6 = vsub.f32 %v640_v60, %v643_v4 }
 0x3f2   : > { %v991_v9 = vpop.eup %990 }
 0x3f3   : > { %v645_v10 = vmul.f32 1.442695, %v644_v6  ;;  %v397_v11 = vsel %vm222_vm1, %v991_v9, 0.0 }
 0x3f4   : > { %398 = vadd.xlane.f32.xlu1 %v397_v11 }
 0x3f5   : > { %992 = vpow2.f32 %v645_v10 }
 0x3f6   : > { %994 = vpow2.f32 %v520_v14 }
 0x402   : > { %v993_v12 = vpop.eup %992 }
 0x403   : > { %v647_v7 = vsel %vm222_vm1, %v993_v12, 0.0  ;;  %v995_v15 = vpop.eup %994 }
 0x404   : > { %648 = vadd.xlane.f32.xlu0 %v647_v7  ;;  %v522_v17 = vsel %vm222_vm1, %v995_v15, 0.0 }
 0x405   : > { %403 = vrot.lane.b32.xlu1 %v1080_v5, %s1020_s29 }
 0x41a   : > { %528 = vrot.lane.b32.xlu0 %v1102_v24, %s1021_s30 }
 0x429   : > { %523 = vadd.xlane.f32.xlu1 %v522_v17 }
 0x43a   : > { %653 = vrot.lane.b32.xlu1 %v1094_v16, %s1022_s5 }
 0x47d   : > { %v399_v18 = vpop.xlane.xlu1 %398 }
 0x47e   : > { %996 = vrcp.f32 %v399_v18 }
 0x481   : > { %v404_v19 = vpop.permute.xlu1 %403 }
 0x482   : > { %v409_v20 = vsel %vm288_vm3, %v404_v19, 0 }
 0x483   : > { %919 = vmatpush3.bf16.msra.mxu0 %v409_v20 }
 0x484   : > { %930 = vmatprep.subr.bf16.mxu0 %v1010_v0 }
 0x48b   : > { %v997_v5 = vpop.eup %996 }
 0x48c   : > { %v401_v21 = vmul.f32 %v997_v5, %v991_v9 }
 0x48d   : > { %v649_v22 = vpop.xlane.xlu0 %648 }
 0x48e   : > { %v402_v23 = vpack.c.bf16 %v401_v21, %v401_v21 }
 0x490   : > { %921 = vmatmul.mubr.msk.bf16.vlgmr.msra.gmra.mxu0 %vm222_vm1, %v402_v23 }
 0x491   : > { %v529_v24 = vpop.permute.xlu0 %528  ;;  %932 = vmatprep.mubr.msk.bf16.mxu0 %vm1011_vm0, %v1010_v0 }
 0x492   : > { %v534_v16 = vsel %vm288_vm3, %v529_v24, 0 }
 0x493   : > { %931 = vmatpush3.bf16.msra.mxu0 %v534_v16 }
 0x494   : > { %942 = vmatprep.subr.bf16.mxu0 %v1010_v0 }
 0x4b2   : > { %v524_v25 = vpop.xlane.xlu1 %523 }
 0x4b3   : > { %998 = vrcp.f32 %v524_v25 }
 0x4b4   : > { %1000 = vrcp.f32 %v649_v22 }
 0x4b6   : > { %v654_v27 = vpop.permute.xlu1 %653 }
 0x4b7   : > { %v659_v29 = vsel %vm288_vm3, %v654_v27, 0 }
 0x4c0   : > { %v999_v26 = vpop.eup %998 }
 0x4c1   : > { %v526_v28 = vmul.f32 %v999_v26, %v995_v15  ;;  %v1001_v31 = vpop.eup %1000 }
 0x4c2   : > { %v651_v32 = vmul.f32 %v1001_v31, %v993_v12 }
 0x4c3   : > { %v527_v30 = vpack.c.bf16 %v526_v28, %v526_v28 }
 0x4c4   : > { %v652_v33 = vpack.c.bf16 %v651_v32, %v651_v32 }
 0x4c5   : > { %933 = vmatmul.mubr.msk.bf16.vlgmr.msra.gmra.mxu0 %vm222_vm1, %v527_v30 }
 0x4c6   : > { %943 = vmatpush3.bf16.msra.mxu0 %v659_v29  ;;  %944 = vmatprep.mubr.msk.bf16.mxu0 %vm1011_vm0, %v1010_v0 }
 0x4cd   : > { %945 = vmatmul.mubr.msk.bf16.vlgmr.msra.gmra.mxu0 %vm222_vm1, %v652_v33 }
 0x550   : > { %v445_v34 = vpop.f32.mrf.mxu0 }
 0x551   : > { %v878_v35 = vpack.c.bf16 %v445_v34, %v445_v34 }
 0x552   : > { %v922_v36 = vpop.f32.mrf.mxu0 }
 0x553   : > { %455 = vrot.lane.b32.xlu1 %v878_v35, %s1023_s6 }
 0x554   : > { %v448_v37 = vpop.f32.mrf.mxu0 }
 0x556   : > { %v923_v38 = vpop.f32.mrf.mxu0 }
 0x585   : > { %v570_v40 = vpop.f32.mrf.mxu0 }
 0x586   : > { %v879_v42 = vpack.c.bf16 %v570_v40, %v570_v40 }
 0x587   : > { %v934_v43 = vpop.f32.mrf.mxu0 }
 0x588   : > { %580 = vrot.lane.b32.xlu0 %v879_v42, %s1024_s11 }
 0x589   : > { %v573_v44 = vpop.f32.mrf.mxu0 }
 0x58b   : > { %v935_v45 = vpop.f32.mrf.mxu0 }
 0x58d   : > { %v695_v46 = vpop.f32.mrf.mxu0 }
 0x58e   : > { %v880_v47 = vpack.c.bf16 %v695_v46, %v695_v46 }
 0x58f   : > { %v946_v48 = vpop.f32.mrf.mxu0 }
 0x590   : > { %705 = vrot.lane.b32.xlu1 %v880_v47, %s1025_s12 }
 0x591   : > { %v698_v49 = vpop.f32.mrf.mxu0 }
 0x593   : > { %v947_v50 = vpop.f32.mrf.mxu0 }
 0x5c5   : > { %v456_v51 = vpop.permute.xlu1 %455 }
 0x5c6   : > { %459 = vst.msk [vmem:[#allocation2] sm:$0xf] %vm458_vm5, %v456_v51 }
 0x5fa   : > { %v581_v52 = vpop.permute.xlu0 %580 }
 0x5fb   : > { %584 = vst.msk [vmem:[#allocation2] sm:$0xf] %vm583_vm6, %v581_v52 }
 0x602   : > { %v706_v0 = vpop.permute.xlu1 %705 }
 0x603   : > { %709 = vst.msk [vmem:[#allocation2] sm:$0xf] %vm708_vm7, %v706_v0 }
 0x60a   : > { %v710_v53 = vld [vmem:[#allocation2] sm:$0xf] }
 0x60b   : > { %953 = vmatmul.mubr.msk.bf16.vlgmr.msra.gmra.mxu1 %vm734_vm8, %v710_v53 }
 0x6cb   : > { %v772_v57 = vpop.f32.mrf.mxu1 }
 0x6cc   : > { %v773_v58 = vadd.f32 %v872_v55, %v772_v57 }
 0x6cd   : > { %v954_v59 = vpop.f32.mrf.mxu1 }
 0x6ce   : > { %v780_v60 = vadd.f32 %v779_v56, %v773_v58 }
 0x6cf   : > { %v775_v61 = vpop.f32.mrf.mxu1 }
 0x6d0   : > { %v781_v62 = vpack.c.bf16 %v780_v60, %v780_v60 }
 0x6d1   : > { %v955_v63 = vpop.f32.mrf.mxu1 }
 0x6d2   : > { %783 = vst.msk [vmem:[%s209_s22] sm:$0xf] %vm782_vm9, %v781_v62 }
 0x6d3 PF: > { %s14_s15 = sadd.s32 1, %s1008_s15  }
 0x6d4   : > { %p11_p4 = scmp.ge.s32.totalorder %s14_s15, 4  }
 0x6d6   :  { %13 = sbr.rel (!%p11_p4) target bundleno = 1 (0x1), region = 69 }

</bundles_post_ra>
